<compile_context>
chip_gen: v7x
topology: tpu7x:2x2x1
jax: 0.10.0
libtpu: 0.0.40
codegen_flags: <defaults>
</compile_context>

<pallas_src>
import functools

import jax
import jax.numpy as jnp
import numpy as np
from jax import lax
from jax.experimental import pallas as pl
from jax.experimental.pallas import tpu as pltpu


def _round_up(x, m):
    return ((x + m - 1) // m) * m


def _default_n_par():
    """2 parallel slices only where the chip has 2 TensorCores (v7x); else 1."""
    try:
        dev = jax.devices()[0]
        kind = str(getattr(dev, "device_kind", "")).lower()
        if "v7" in kind:
            return 2
    except Exception:
        pass
    return 1


def _yolo_loss_kernel(pred_ref, tgt_ref, out_ref, acc_ref, *,
                      S, B, C, l_coord, l_noobj, tile_rows):
    """pred_ref / tgt_ref: (B*5+C, tile_rows, 128) tiles (native input dtype).
    out_ref: (1, 1, 1) f32 per-parallel-slice partial sum.
    acc_ref: (8, 128) f32 VMEM scratch accumulator, resident across the tile axis."""
    i = pl.program_id(1)

    @pl.when(i == 0)
    def _():
        acc_ref[...] = jnp.zeros_like(acc_ref)

    inv_s = 1.0 / float(S)
    n_chunks = tile_rows // 8

    def chunk_body(r, carry):
        row = r * 8
        if not isinstance(row, int):
            row = pl.multiple_of(row, 8)

        def ld(ref, c):
            # one (8,128) vreg per channel chunk, cast to f32 in-register
            return ref[c, pl.ds(row, 8), :].astype(jnp.float32)

        def box(ref, j):
            b = j * 5
            return [ld(ref, b + t) for t in range(5)]   # x, y, w, h, conf

        pb = [box(pred_ref, j) for j in range(B)]
        tb = [box(tgt_ref, j) for j in range(B)]

        tconf0 = tb[0][4]                 # target confidence of box 0 decides obj / noobj
        obj = tconf0 > 0.0
        noobj = tconf0 == 0.0

        cell = jnp.zeros_like(tconf0)     # fused per-cell loss map

        # ---------- no-object loss: conf of every box on no-object cells ----------
        nsq = jnp.zeros_like(tconf0)
        for j in range(B):
            d = pb[j][4] - tb[j][4]
            nsq = nsq + d * d
        cell = cell + l_noobj * jnp.where(noobj, nsq, 0.0)

        # ---------- class loss over object cells (running sum; channels die fast) ----------
        csq = jnp.zeros_like(tconf0)
        for c in range(C):
            d = ld(pred_ref, B * 5 + c) - ld(tgt_ref, B * 5 + c)
            csq = csq + d * d
        cell = cell + jnp.where(obj, csq, 0.0)

        # ---------- corners + areas (each array is exactly one vreg at 8-row chunks) ----------
        def corners(x, y, w, h):
            cx = x * inv_s
            cy = y * inv_s
            hw = 0.5 * w
            hh = 0.5 * h
            x1, y1, x2, y2 = cx - hw, cy - hh, cx + hw, cy + hh
            area = (x2 - x1) * (y2 - y1)
            return x1, y1, x2, y2, area

        pcn = [corners(*b[:4]) for b in pb]
        tcn = [corners(*b[:4]) for b in tb]

        def iou(p, t):
            px1, py1, px2, py2, pa = p
            tx1, ty1, tx2, ty2, ta = t
            iw = jnp.maximum(jnp.minimum(px2, tx2) - jnp.maximum(px1, tx1), 0.0)
            ih = jnp.maximum(jnp.minimum(py2, ty2) - jnp.maximum(py1, ty1), 0.0)
            inter = iw * ih
            # clamp only guards all-zero padded cells; exact divide matches the reference
            denom = jnp.maximum(pa + ta - inter, 1e-12)
            return inter / denom

        # iou_mat[j][k] : IoU(pred box j, target box k)
        iou_mat = [[iou(pcn[j], tcn[k]) for k in range(B)] for j in range(B)]

        # per target box k: argmax over pred boxes (ties -> first); max value needed only for k=0
        best_idx = []
        best_iou0 = None
        for k in range(B):
            bi = jnp.zeros(tconf0.shape, jnp.int32)
            bv = iou_mat[0][k]
            for j in range(1, B):
                better = iou_mat[j][k] > bv
                bi = jnp.where(better, j, bi)
                bv = jnp.where(better, iou_mat[j][k], bv)
            best_idx.append(bi)
            if k == 0:
                best_iou0 = bv

        # ---------- regression + containing-confidence losses (masked, fused) ----------
        for j in range(B):
            sel = best_idx[0] == j
            for k in range(1, B):
                sel = sel | (best_idx[k] == j)
            msk = obj & sel
            # only the pred box picked for target box 0 gets the max IoU as its conf target
            iou_conf = jnp.where(best_idx[0] == j, best_iou0, 0.0)

            px, py, pw, ph, pcf = pb[j]
            tx, ty, tw, th = tb[j][0], tb[j][1], tb[j][2], tb[j][3]
            # guard sqrt on masked-out rows so no NaNs leak through the sums
            sw_p = jnp.sqrt(jnp.where(msk, pw, 1.0))
            sh_p = jnp.sqrt(jnp.where(msk, ph, 1.0))
            sw_t = jnp.sqrt(jnp.where(msk, tw, 1.0))
            sh_t = jnp.sqrt(jnp.where(msk, th, 1.0))

            reg_j = (px - tx) ** 2 + (py - ty) ** 2 + (sw_p - sw_t) ** 2 + (sh_p - sh_t) ** 2
            con_j = (pcf - iou_conf) ** 2
            cell = cell + jnp.where(msk, l_coord * reg_j + con_j, 0.0)

        acc_ref[...] = acc_ref[...] + cell
        return carry

    if n_chunks == 1:
        chunk_body(0, 0)
    else:
        # real loop bounds the live vreg set to one chunk (~50 vregs); fully unroll
        # only short loops so instruction memory / compile time stay sane.
        lax.fori_loop(0, n_chunks, chunk_body, 0, unroll=(n_chunks <= 8))

    @pl.when(i == pl.num_programs(1) - 1)
    def _():
        # single cross-sublane/lane reduction + 1-element store per parallel slice
        out_ref[...] = jnp.zeros_like(out_ref) + jnp.sum(acc_ref[...])


def yolo_loss(pred, target, *, S, B, C=20, l_coord, l_noobj,
              tile_rows=256, n_par=None):
    batch = pred.shape[0]
    n_el = B * 5 + C
    nc = batch * S * S
    lanes = 128

    if n_par is None:
        n_par = _default_n_par()
    n_par = max(1, int(n_par))

    # keep the native dtype (no wrapper upcast); the kernel casts per 8-row chunk
    p2 = pred.reshape(nc, n_el)
    t2 = target.reshape(nc, n_el)
    itemsize = jnp.dtype(p2.dtype).itemsize

    # sublane alignment of the second-minor block dim for the native dtype
    align = {4: 8, 2: 16, 1: 32}.get(itemsize, 8)

    # cap the tile so 2 inputs x 2 pipeline buffers stay under ~48 MiB of VMEM
    # (safe inside v7x's 64 MiB physical VMEM; v5e/v6e have 128 MiB)
    tr_cap = max(align, ((48 << 20) // (4 * n_el * lanes * itemsize)) // align * align)

    rows_min = pl.cdiv(nc, lanes)
    tr = _round_up(min(tile_rows, tr_cap, _round_up(rows_min, align)), align)
    tiles_per_par = max(1, pl.cdiv(rows_min, tr * n_par))
    rows = tiles_per_par * tr * n_par
    nc_pad = rows * lanes

    pad = nc_pad - nc
    if pad:
        # zero padding => target conf == 0 and pred conf == 0 -> contributes exactly 0 loss
        p2 = jnp.pad(p2, ((0, pad), (0, 0)))
        t2 = jnp.pad(t2, ((0, pad), (0, 0)))

    # channel-major: channels lead, cells spread over the (sublane, lane) axes.
    # TODO(synk): drop this pad+transpose (one extra HBM pass) if the producer can
    # emit (n_el, cells) channel-major directly.
    p3 = p2.T.reshape(n_el, rows, lanes)
    t3 = t2.T.reshape(n_el, rows, lanes)

    kernel = functools.partial(_yolo_loss_kernel, S=S, B=B, C=C,
                               l_coord=float(l_coord), l_noobj=float(l_noobj),
                               tile_rows=tr)

    # explicit scoped-VMEM limit: double-buffered inputs + slack
    tile_bytes = n_el * tr * lanes * itemsize
    vmem_limit = int(min(max(2 * 2 * tile_bytes + (4 << 20), 16 << 20), 100 << 20))

    in_map = lambda p, i: (0, p * tiles_per_par + i, 0)
    partials = pl.pallas_call(
        kernel,
        out_shape=jax.ShapeDtypeStruct((n_par, 1, 1), jnp.float32),
        grid=(n_par, tiles_per_par),
        in_specs=[pl.BlockSpec((n_el, tr, lanes), in_map),
                  pl.BlockSpec((n_el, tr, lanes), in_map)],
        out_specs=pl.BlockSpec((1, 1, 1), lambda p, i: (p, 0, 0)),
        scratch_shapes=[pltpu.VMEM((8, lanes), jnp.float32)],
        compiler_params=pltpu.CompilerParams(
            dimension_semantics=("parallel", "arbitrary"),
            vmem_limit_bytes=vmem_limit),
    )(p3, t3)

    # combine per-core partial sums and apply the batch normalization
    return jnp.sum(partials) / batch


def _reference_loss_np(pred, target, S, B, C, l_coord, l_noobj):
    """Numpy reference mirroring the PyTorch code structure (masks + per-cell loop)."""
    pred = pred.astype(np.float32)
    target = target.astype(np.float32)
    n_el = B * 5 + C
    batch = target.shape[0]
    obj_mask = target[..., 4] > 0
    noobj_mask = target[..., 4] == 0

    coord_pred = pred[obj_mask].reshape(-1, n_el)
    coord_target = target[obj_mask].reshape(-1, n_el)
    class_pred = coord_pred[:, B * 5:]
    class_target = coord_target[:, B * 5:]
    box_pred = coord_pred[:, :B * 5].reshape(-1, 5)
    box_target = coord_target[:, :B * 5].reshape(-1, 5)

    noobj_pred = pred[noobj_mask].reshape(-1, n_el)
    noobj_target = target[noobj_mask].reshape(-1, n_el)
    conf_cols = [i * 5 + 4 for i in range(B)]
    noobj_loss = np.sum((noobj_pred[:, conf_cols] - noobj_target[:, conf_cols]) ** 2)

    coo_mask = np.zeros(box_target.shape, dtype=bool)
    box_target_iou = np.zeros_like(box_target)
    for i in range(0, box_target.shape[0], B):
        bp = box_pred[i:i + B]
        bt = box_target[i:i + B]
        p = np.concatenate([bp[:, :2] / S - bp[:, 2:4] / 2,
                            bp[:, :2] / S + bp[:, 2:4] / 2], axis=1)
        t = np.concatenate([bt[:, :2] / S - bt[:, 2:4] / 2,
                            bt[:, :2] / S + bt[:, 2:4] / 2], axis=1)
        lt = np.maximum(p[:, None, :2], t[None, :, :2])
        rb = np.minimum(p[:, None, 2:], t[None, :, 2:])
        wh = np.clip(rb - lt, 0, None)
        inter = wh[..., 0] * wh[..., 1]
        a1 = (p[:, 2] - p[:, 0]) * (p[:, 3] - p[:, 1])
        a2 = (t[:, 2] - t[:, 0]) * (t[:, 3] - t[:, 1])
        iou = inter / (a1[:, None] + a2[None, :] - inter)
        max_iou = iou.max(axis=0)
        max_idx = iou.argmax(axis=0)
        coo_mask[i + max_idx] = True
        box_target_iou[i + max_idx[0], -1] = max_iou[0]

    bpr = box_pred[coo_mask].reshape(-1, 5)
    btr = box_target[coo_mask].reshape(-1, 5)
    btr_iou = box_target_iou[coo_mask].reshape(-1, 5)
    contain_loss = np.sum((bpr[:, 4] - btr_iou[:, 4]) ** 2)
    reg_loss = (np.sum((bpr[:, :2] - btr[:, :2]) ** 2)
                + np.sum((np.sqrt(bpr[:, 2:4]) - np.sqrt(btr[:, 2:4])) ** 2))
    class_loss = np.sum((class_pred - class_target) ** 2)
    return float((l_coord * reg_loss + contain_loss + l_noobj * noobj_loss + class_loss) / batch)


def _make_inputs(key, batch, S, n_el):
    kp, kt, km = jax.random.split(key, 3)
    # keep x, y, w, h, conf, class scores in (0.05, 0.95) so sqrt/IoU are well defined
    pred = jax.random.uniform(kp, (batch, S, S, n_el), jnp.float32, 0.05, 0.95)
    target = jax.random.uniform(kt, (batch, S, S, n_el), jnp.float32, 0.05, 0.95)
    # ~30% of cells contain an object (target confidence at channel 4 > 0),
    # the rest get confidence exactly 0 (no-object cells)
    has_obj = jax.random.uniform(km, (batch, S, S)) < 0.3
    target = target.at[..., 4].set(jnp.where(has_obj, target[..., 4], 0.0))
    return pred, target


if __name__ == "__main__":
    B, C = 2, 20
    l_coord, l_noobj = 5.0, 0.5
    n_el = B * 5 + C
    key = jax.random.PRNGKey(0)
    k1, k2 = jax.random.split(key)

    # --- case 1: module-sized toy problem (batch=2, S=7) ---
    S1, batch1 = 7, 2
    pred1, target1 = _make_inputs(k1, batch1, S1, n_el)
    loss1 = jax.block_until_ready(
        yolo_loss(pred1, target1, S=S1, B=B, C=C, l_coord=l_coord, l_noobj=l_noobj))
    ref1 = _reference_loss_np(np.asarray(pred1), np.asarray(target1), S1, B, C, l_coord, l_noobj)
    assert np.allclose(float(loss1), ref1, rtol=1e-4, atol=1e-3), (float(loss1), ref1)

    # --- case 2: exercises the multi-chunk inner loop and multi-tile accumulation ---
    S2, batch2 = 12, 8
    pred2, target2 = _make_inputs(k2, batch2, S2, n_el)
    ref2 = _reference_loss_np(np.asarray(pred2), np.asarray(target2), S2, B, C, l_coord, l_noobj)

    loss2a = jax.block_until_ready(        # default tile -> >1 chunk per tile
        yolo_loss(pred2, target2, S=S2, B=B, C=C, l_coord=l_coord, l_noobj=l_noobj))
    loss2b = jax.block_until_ready(        # tiny tile -> >1 grid step per slice (accumulator path)
        yolo_loss(pred2, target2, S=S2, B=B, C=C, l_coord=l_coord, l_noobj=l_noobj, tile_rows=8))
    assert np.allclose(float(loss2a), ref2, rtol=1e-4, atol=1e-3), (float(loss2a), ref2)
    assert np.allclose(float(loss2b), ref2, rtol=1e-4, atol=1e-3), (float(loss2b), ref2)

    print("KERNEL_OK")
</pallas_src>

<mosaic_0001>
module attributes {stable_mosaic.version = 11 : i64} {
  func.func @_yolo_loss_kernel(%arg0: i32, %arg1: i32, %arg2: memref<30x8x128xf32, #tpu.memory_space<vmem>>, %arg3: memref<30x8x128xf32, #tpu.memory_space<vmem>>, %arg4: memref<1x1x1xf32, #tpu.memory_space<vmem>>, %arg5: memref<8x128xf32, #tpu.memory_space<vmem>>) attributes {dimension_semantics = [#tpu.dimension_semantics<parallel>, #tpu.dimension_semantics<arbitrary>], iteration_bounds = array<i64: 1, 1>, scalar_prefetch = 0 : i64, scratch_operands = 1 : i64, tpu.core_type = #tpu.core_type<tc>, window_params = [{transform_indices = @transform_0, window_bounds = array<i64: 30, 8, 128>}, {transform_indices = @transform_1, window_bounds = array<i64: 30, 8, 128>}, {transform_indices = @transform_2, window_bounds = array<i64: 1, 1, 1>}]} {
    %c0_i32 = arith.constant 0 : i32
    %0 = arith.cmpi eq, %arg1, %c0_i32 : i32
    %1 = arith.extui %0 : i1 to i32
    %c0_i32_0 = arith.constant 0 : i32
    %2 = arith.cmpi ne, %1, %c0_i32_0 : i32
    scf.if %2 {
      %cst_215 = arith.constant 0.000000e+00 : f32
      %425 = vector.broadcast %cst_215 : f32 to vector<8x128xf32>
      %c0_216 = arith.constant 0 : index
      %c0_217 = arith.constant 0 : index
      %426 = vector.load %arg5[%c0_216, %c0_217] : memref<8x128xf32, #tpu.memory_space<vmem>>, vector<8x128xf32>
      tpu.vector_store %arg5[%c0_216, %c0_217], %425 {strides = array<i32>} : memref<8x128xf32, #tpu.memory_space<vmem>>, vector<8x128xf32>,
    } else {
    }
    %c0 = arith.constant 0 : index
    %c0_1 = arith.constant 0 : index
    %c0_2 = arith.constant 0 : index
    %3 = vector.load %arg2[%c0, %c0_1, %c0_2] : memref<30x8x128xf32, #tpu.memory_space<vmem>>, vector<1x8x128xf32>
    %4 = vector.shape_cast %3 : vector<1x8x128xf32> to vector<8x128xf32>
    %c1 = arith.constant 1 : index
    %c0_3 = arith.constant 0 : index
    %c0_4 = arith.constant 0 : index
    %5 = vector.load %arg2[%c1, %c0_3, %c0_4] : memref<30x8x128xf32, #tpu.memory_space<vmem>>, vector<1x8x128xf32>
    %6 = vector.shape_cast %5 : vector<1x8x128xf32> to vector<8x128xf32>
    %c2 = arith.constant 2 : index
    %c0_5 = arith.constant 0 : index
    %c0_6 = arith.constant 0 : index
    %7 = vector.load %arg2[%c2, %c0_5, %c0_6] : memref<30x8x128xf32, #tpu.memory_space<vmem>>, vector<1x8x128xf32>
    %8 = vector.shape_cast %7 : vector<1x8x128xf32> to vector<8x128xf32>
    %c3 = arith.constant 3 : index
    %c0_7 = arith.constant 0 : index
    %c0_8 = arith.constant 0 : index
    %9 = vector.load %arg2[%c3, %c0_7, %c0_8] : memref<30x8x128xf32, #tpu.memory_space<vmem>>, vector<1x8x128xf32>
    %10 = vector.shape_cast %9 : vector<1x8x128xf32> to vector<8x128xf32>
    %c4 = arith.constant 4 : index
    %c0_9 = arith.constant 0 : index
    %c0_10 = arith.constant 0 : index
    %11 = vector.load %arg2[%c4, %c0_9, %c0_10] : memref<30x8x128xf32, #tpu.memory_space<vmem>>, vector<1x8x128xf32>
    %12 = vector.shape_cast %11 : vector<1x8x128xf32> to vector<8x128xf32>
    %c5 = arith.constant 5 : index
    %c0_11 = arith.constant 0 : index
    %c0_12 = arith.constant 0 : index
    %13 = vector.load %arg2[%c5, %c0_11, %c0_12] : memref<30x8x128xf32, #tpu.memory_space<vmem>>, vector<1x8x128xf32>
    %14 = vector.shape_cast %13 : vector<1x8x128xf32> to vector<8x128xf32>
    %c6 = arith.constant 6 : index
    %c0_13 = arith.constant 0 : index
    %c0_14 = arith.constant 0 : index
    %15 = vector.load %arg2[%c6, %c0_13, %c0_14] : memref<30x8x128xf32, #tpu.memory_space<vmem>>, vector<1x8x128xf32>
    %16 = vector.shape_cast %15 : vector<1x8x128xf32> to vector<8x128xf32>
    %c7 = arith.constant 7 : index
    %c0_15 = arith.constant 0 : index
    %c0_16 = arith.constant 0 : index
    %17 = vector.load %arg2[%c7, %c0_15, %c0_16] : memref<30x8x128xf32, #tpu.memory_space<vmem>>, vector<1x8x128xf32>
    %18 = vector.shape_cast %17 : vector<1x8x128xf32> to vector<8x128xf32>
    %c8 = arith.constant 8 : index
    %c0_17 = arith.constant 0 : index
    %c0_18 = arith.constant 0 : index
    %19 = vector.load %arg2[%c8, %c0_17, %c0_18] : memref<30x8x128xf32, #tpu.memory_space<vmem>>, vector<1x8x128xf32>
    %20 = vector.shape_cast %19 : vector<1x8x128xf32> to vector<8x128xf32>
    %c9 = arith.constant 9 : index
    %c0_19 = arith.constant 0 : index
    %c0_20 = arith.constant 0 : index
    %21 = vector.load %arg2[%c9, %c0_19, %c0_20] : memref<30x8x128xf32, #tpu.memory_space<vmem>>, vector<1x8x128xf32>
    %22 = vector.shape_cast %21 : vector<1x8x128xf32> to vector<8x128xf32>
    %c0_21 = arith.constant 0 : index
    %c0_22 = arith.constant 0 : index
    %c0_23 = arith.constant 0 : index
    %23 = vector.load %arg3[%c0_21, %c0_22, %c0_23] : memref<30x8x128xf32, #tpu.memory_space<vmem>>, vector<1x8x128xf32>
    %24 = vector.shape_cast %23 : vector<1x8x128xf32> to vector<8x128xf32>
    %c1_24 = arith.constant 1 : index
    %c0_25 = arith.constant 0 : index
    %c0_26 = arith.constant 0 : index
    %25 = vector.load %arg3[%c1_24, %c0_25, %c0_26] : memref<30x8x128xf32, #tpu.memory_space<vmem>>, vector<1x8x128xf32>
    %26 = vector.shape_cast %25 : vector<1x8x128xf32> to vector<8x128xf32>
    %c2_27 = arith.constant 2 : index
    %c0_28 = arith.constant 0 : index
    %c0_29 = arith.constant 0 : index
    %27 = vector.load %arg3[%c2_27, %c0_28, %c0_29] : memref<30x8x128xf32, #tpu.memory_space<vmem>>, vector<1x8x128xf32>
    %28 = vector.shape_cast %27 : vector<1x8x128xf32> to vector<8x128xf32>
    %c3_30 = arith.constant 3 : index
    %c0_31 = arith.constant 0 : index
    %c0_32 = arith.constant 0 : index
    %29 = vector.load %arg3[%c3_30, %c0_31, %c0_32] : memref<30x8x128xf32, #tpu.memory_space<vmem>>, vector<1x8x128xf32>
    %30 = vector.shape_cast %29 : vector<1x8x128xf32> to vector<8x128xf32>
    %c4_33 = arith.constant 4 : index
    %c0_34 = arith.constant 0 : index
    %c0_35 = arith.constant 0 : index
    %31 = vector.load %arg3[%c4_33, %c0_34, %c0_35] : memref<30x8x128xf32, #tpu.memory_space<vmem>>, vector<1x8x128xf32>
    %32 = vector.shape_cast %31 : vector<1x8x128xf32> to vector<8x128xf32>
    %c5_36 = arith.constant 5 : index
    %c0_37 = arith.constant 0 : index
    %c0_38 = arith.constant 0 : index
    %33 = vector.load %arg3[%c5_36, %c0_37, %c0_38] : memref<30x8x128xf32, #tpu.memory_space<vmem>>, vector<1x8x128xf32>
    %34 = vector.shape_cast %33 : vector<1x8x128xf32> to vector<8x128xf32>
    %c6_39 = arith.constant 6 : index
    %c0_40 = arith.constant 0 : index
    %c0_41 = arith.constant 0 : index
    %35 = vector.load %arg3[%c6_39, %c0_40, %c0_41] : memref<30x8x128xf32, #tpu.memory_space<vmem>>, vector<1x8x128xf32>
    %36 = vector.shape_cast %35 : vector<1x8x128xf32> to vector<8x128xf32>
    %c7_42 = arith.constant 7 : index
    %c0_43 = arith.constant 0 : index
    %c0_44 = arith.constant 0 : index
    %37 = vector.load %arg3[%c7_42, %c0_43, %c0_44] : memref<30x8x128xf32, #tpu.memory_space<vmem>>, vector<1x8x128xf32>
    %38 = vector.shape_cast %37 : vector<1x8x128xf32> to vector<8x128xf32>
    %c8_45 = arith.constant 8 : index
    %c0_46 = arith.constant 0 : index
    %c0_47 = arith.constant 0 : index
    %39 = vector.load %arg3[%c8_45, %c0_46, %c0_47] : memref<30x8x128xf32, #tpu.memory_space<vmem>>, vector<1x8x128xf32>
    %40 = vector.shape_cast %39 : vector<1x8x128xf32> to vector<8x128xf32>
    %c9_48 = arith.constant 9 : index
    %c0_49 = arith.constant 0 : index
    %c0_50 = arith.constant 0 : index
    %41 = vector.load %arg3[%c9_48, %c0_49, %c0_50] : memref<30x8x128xf32, #tpu.memory_space<vmem>>, vector<1x8x128xf32>
    %42 = vector.shape_cast %41 : vector<1x8x128xf32> to vector<8x128xf32>
    %cst = arith.constant 0.000000e+00 : f32
    %43 = vector.broadcast %cst : f32 to vector<8x128xf32>
    %44 = arith.cmpf ogt, %32, %43 : vector<8x128xf32>
    %cst_51 = arith.constant 0.000000e+00 : f32
    %45 = vector.broadcast %cst_51 : f32 to vector<8x128xf32>
    %46 = arith.cmpf oeq, %32, %45 : vector<8x128xf32>
    %cst_52 = arith.constant 0.000000e+00 : f32
    %47 = vector.broadcast %cst_52 : f32 to vector<8x128xf32>
    %cst_53 = arith.constant 0.000000e+00 : f32
    %48 = vector.broadcast %cst_53 : f32 to vector<8x128xf32>
    %49 = arith.subf %12, %32 : vector<8x128xf32>
    %50 = arith.mulf %49, %49 : vector<8x128xf32>
    %51 = arith.addf %48, %50 : vector<8x128xf32>
    %52 = arith.subf %22, %42 : vector<8x128xf32>
    %53 = arith.mulf %52, %52 : vector<8x128xf32>
    %54 = arith.addf %51, %53 : vector<8x128xf32>
    %cst_54 = arith.constant 0.000000e+00 : f32
    %55 = vector.broadcast %cst_54 : f32 to vector<8x128xf32>
    %56 = arith.select %46, %54, %55 : vector<8x128xi1>, vector<8x128xf32>
    %cst_55 = arith.constant 5.000000e-01 : f32
    %57 = vector.broadcast %cst_55 : f32 to vector<8x128xf32>
    %58 = arith.mulf %57, %56 : vector<8x128xf32>
    %59 = arith.addf %47, %58 : vector<8x128xf32>
    %cst_56 = arith.constant 0.000000e+00 : f32
    %60 = vector.broadcast %cst_56 : f32 to vector<8x128xf32>
    %c10 = arith.constant 10 : index
    %c0_57 = arith.constant 0 : index
    %c0_58 = arith.constant 0 : index
    %61 = vector.load %arg2[%c10, %c0_57, %c0_58] : memref<30x8x128xf32, #tpu.memory_space<vmem>>, vector<1x8x128xf32>
    %62 = vector.shape_cast %61 : vector<1x8x128xf32> to vector<8x128xf32>
    %c10_59 = arith.constant 10 : index
    %c0_60 = arith.constant 0 : index
    %c0_61 = arith.constant 0 : index
    %63 = vector.load %arg3[%c10_59, %c0_60, %c0_61] : memref<30x8x128xf32, #tpu.memory_space<vmem>>, vector<1x8x128xf32>
    %64 = vector.shape_cast %63 : vector<1x8x128xf32> to vector<8x128xf32>
    %65 = arith.subf %62, %64 : vector<8x128xf32>
    %66 = arith.mulf %65, %65 : vector<8x128xf32>
    %67 = arith.addf %60, %66 : vector<8x128xf32>
    %c11 = arith.constant 11 : index
    %c0_62 = arith.constant 0 : index
    %c0_63 = arith.constant 0 : index
    %68 = vector.load %arg2[%c11, %c0_62, %c0_63] : memref<30x8x128xf32, #tpu.memory_space<vmem>>, vector<1x8x128xf32>
    %69 = vector.shape_cast %68 : vector<1x8x128xf32> to vector<8x128xf32>
    %c11_64 = arith.constant 11 : index
    %c0_65 = arith.constant 0 : index
    %c0_66 = arith.constant 0 : index
    %70 = vector.load %arg3[%c11_64, %c0_65, %c0_66] : memref<30x8x128xf32, #tpu.memory_space<vmem>>, vector<1x8x128xf32>
    %71 = vector.shape_cast %70 : vector<1x8x128xf32> to vector<8x128xf32>
    %72 = arith.subf %69, %71 : vector<8x128xf32>
    %73 = arith.mulf %72, %72 : vector<8x128xf32>
    %74 = arith.addf %67, %73 : vector<8x128xf32>
    %c12 = arith.constant 12 : index
    %c0_67 = arith.constant 0 : index
    %c0_68 = arith.constant 0 : index
    %75 = vector.load %arg2[%c12, %c0_67, %c0_68] : memref<30x8x128xf32, #tpu.memory_space<vmem>>, vector<1x8x128xf32>
    %76 = vector.shape_cast %75 : vector<1x8x128xf32> to vector<8x128xf32>
    %c12_69 = arith.constant 12 : index
    %c0_70 = arith.constant 0 : index
    %c0_71 = arith.constant 0 : index
    %77 = vector.load %arg3[%c12_69, %c0_70, %c0_71] : memref<30x8x128xf32, #tpu.memory_space<vmem>>, vector<1x8x128xf32>
    %78 = vector.shape_cast %77 : vector<1x8x128xf32> to vector<8x128xf32>
    %79 = arith.subf %76, %78 : vector<8x128xf32>
    %80 = arith.mulf %79, %79 : vector<8x128xf32>
    %81 = arith.addf %74, %80 : vector<8x128xf32>
    %c13 = arith.constant 13 : index
    %c0_72 = arith.constant 0 : index
    %c0_73 = arith.constant 0 : index
    %82 = vector.load %arg2[%c13, %c0_72, %c0_73] : memref<30x8x128xf32, #tpu.memory_space<vmem>>, vector<1x8x128xf32>
    %83 = vector.shape_cast %82 : vector<1x8x128xf32> to vector<8x128xf32>
    %c13_74 = arith.constant 13 : index
    %c0_75 = arith.constant 0 : index
    %c0_76 = arith.constant 0 : index
    %84 = vector.load %arg3[%c13_74, %c0_75, %c0_76] : memref<30x8x128xf32, #tpu.memory_space<vmem>>, vector<1x8x128xf32>
    %85 = vector.shape_cast %84 : vector<1x8x128xf32> to vector<8x128xf32>
    %86 = arith.subf %83, %85 : vector<8x128xf32>
    %87 = arith.mulf %86, %86 : vector<8x128xf32>
    %88 = arith.addf %81, %87 : vector<8x128xf32>
    %c14 = arith.constant 14 : index
    %c0_77 = arith.constant 0 : index
    %c0_78 = arith.constant 0 : index
    %89 = vector.load %arg2[%c14, %c0_77, %c0_78] : memref<30x8x128xf32, #tpu.memory_space<vmem>>, vector<1x8x128xf32>
    %90 = vector.shape_cast %89 : vector<1x8x128xf32> to vector<8x128xf32>
    %c14_79 = arith.constant 14 : index
    %c0_80 = arith.constant 0 : index
    %c0_81 = arith.constant 0 : index
    %91 = vector.load %arg3[%c14_79, %c0_80, %c0_81] : memref<30x8x128xf32, #tpu.memory_space<vmem>>, vector<1x8x128xf32>
    %92 = vector.shape_cast %91 : vector<1x8x128xf32> to vector<8x128xf32>
    %93 = arith.subf %90, %92 : vector<8x128xf32>
    %94 = arith.mulf %93, %93 : vector<8x128xf32>
    %95 = arith.addf %88, %94 : vector<8x128xf32>
    %c15 = arith.constant 15 : index
    %c0_82 = arith.constant 0 : index
    %c0_83 = arith.constant 0 : index
    %96 = vector.load %arg2[%c15, %c0_82, %c0_83] : memref<30x8x128xf32, #tpu.memory_space<vmem>>, vector<1x8x128xf32>
    %97 = vector.shape_cast %96 : vector<1x8x128xf32> to vector<8x128xf32>
    %c15_84 = arith.constant 15 : index
    %c0_85 = arith.constant 0 : index
    %c0_86 = arith.constant 0 : index
    %98 = vector.load %arg3[%c15_84, %c0_85, %c0_86] : memref<30x8x128xf32, #tpu.memory_space<vmem>>, vector<1x8x128xf32>
    %99 = vector.shape_cast %98 : vector<1x8x128xf32> to vector<8x128xf32>
    %100 = arith.subf %97, %99 : vector<8x128xf32>
    %101 = arith.mulf %100, %100 : vector<8x128xf32>
    %102 = arith.addf %95, %101 : vector<8x128xf32>
    %c16 = arith.constant 16 : index
    %c0_87 = arith.constant 0 : index
    %c0_88 = arith.constant 0 : index
    %103 = vector.load %arg2[%c16, %c0_87, %c0_88] : memref<30x8x128xf32, #tpu.memory_space<vmem>>, vector<1x8x128xf32>
    %104 = vector.shape_cast %103 : vector<1x8x128xf32> to vector<8x128xf32>
    %c16_89 = arith.constant 16 : index
    %c0_90 = arith.constant 0 : index
    %c0_91 = arith.constant 0 : index
    %105 = vector.load %arg3[%c16_89, %c0_90, %c0_91] : memref<30x8x128xf32, #tpu.memory_space<vmem>>, vector<1x8x128xf32>
    %106 = vector.shape_cast %105 : vector<1x8x128xf32> to vector<8x128xf32>
    %107 = arith.subf %104, %106 : vector<8x128xf32>
    %108 = arith.mulf %107, %107 : vector<8x128xf32>
    %109 = arith.addf %102, %108 : vector<8x128xf32>
    %c17 = arith.constant 17 : index
    %c0_92 = arith.constant 0 : index
    %c0_93 = arith.constant 0 : index
    %110 = vector.load %arg2[%c17, %c0_92, %c0_93] : memref<30x8x128xf32, #tpu.memory_space<vmem>>, vector<1x8x128xf32>
    %111 = vector.shape_cast %110 : vector<1x8x128xf32> to vector<8x128xf32>
    %c17_94 = arith.constant 17 : index
    %c0_95 = arith.constant 0 : index
    %c0_96 = arith.constant 0 : index
    %112 = vector.load %arg3[%c17_94, %c0_95, %c0_96] : memref<30x8x128xf32, #tpu.memory_space<vmem>>, vector<1x8x128xf32>
    %113 = vector.shape_cast %112 : vector<1x8x128xf32> to vector<8x128xf32>
    %114 = arith.subf %111, %113 : vector<8x128xf32>
    %115 = arith.mulf %114, %114 : vector<8x128xf32>
    %116 = arith.addf %109, %115 : vector<8x128xf32>
    %c18 = arith.constant 18 : index
    %c0_97 = arith.constant 0 : index
    %c0_98 = arith.constant 0 : index
    %117 = vector.load %arg2[%c18, %c0_97, %c0_98] : memref<30x8x128xf32, #tpu.memory_space<vmem>>, vector<1x8x128xf32>
    %118 = vector.shape_cast %117 : vector<1x8x128xf32> to vector<8x128xf32>
    %c18_99 = arith.constant 18 : index
    %c0_100 = arith.constant 0 : index
    %c0_101 = arith.constant 0 : index
    %119 = vector.load %arg3[%c18_99, %c0_100, %c0_101] : memref<30x8x128xf32, #tpu.memory_space<vmem>>, vector<1x8x128xf32>
    %120 = vector.shape_cast %119 : vector<1x8x128xf32> to vector<8x128xf32>
    %121 = arith.subf %118, %120 : vector<8x128xf32>
    %122 = arith.mulf %121, %121 : vector<8x128xf32>
    %123 = arith.addf %116, %122 : vector<8x128xf32>
    %c19 = arith.constant 19 : index
    %c0_102 = arith.constant 0 : index
    %c0_103 = arith.constant 0 : index
    %124 = vector.load %arg2[%c19, %c0_102, %c0_103] : memref<30x8x128xf32, #tpu.memory_space<vmem>>, vector<1x8x128xf32>
    %125 = vector.shape_cast %124 : vector<1x8x128xf32> to vector<8x128xf32>
    %c19_104 = arith.constant 19 : index
    %c0_105 = arith.constant 0 : index
    %c0_106 = arith.constant 0 : index
    %126 = vector.load %arg3[%c19_104, %c0_105, %c0_106] : memref<30x8x128xf32, #tpu.memory_space<vmem>>, vector<1x8x128xf32>
    %127 = vector.shape_cast %126 : vector<1x8x128xf32> to vector<8x128xf32>
    %128 = arith.subf %125, %127 : vector<8x128xf32>
    %129 = arith.mulf %128, %128 : vector<8x128xf32>
    %130 = arith.addf %123, %129 : vector<8x128xf32>
    %c20 = arith.constant 20 : index
    %c0_107 = arith.constant 0 : index
    %c0_108 = arith.constant 0 : index
    %131 = vector.load %arg2[%c20, %c0_107, %c0_108] : memref<30x8x128xf32, #tpu.memory_space<vmem>>, vector<1x8x128xf32>
    %132 = vector.shape_cast %131 : vector<1x8x128xf32> to vector<8x128xf32>
    %c20_109 = arith.constant 20 : index
    %c0_110 = arith.constant 0 : index
    %c0_111 = arith.constant 0 : index
    %133 = vector.load %arg3[%c20_109, %c0_110, %c0_111] : memref<30x8x128xf32, #tpu.memory_space<vmem>>, vector<1x8x128xf32>
    %134 = vector.shape_cast %133 : vector<1x8x128xf32> to vector<8x128xf32>
    %135 = arith.subf %132, %134 : vector<8x128xf32>
    %136 = arith.mulf %135, %135 : vector<8x128xf32>
    %137 = arith.addf %130, %136 : vector<8x128xf32>
    %c21 = arith.constant 21 : index
    %c0_112 = arith.constant 0 : index
    %c0_113 = arith.constant 0 : index
    %138 = vector.load %arg2[%c21, %c0_112, %c0_113] : memref<30x8x128xf32, #tpu.memory_space<vmem>>, vector<1x8x128xf32>
    %139 = vector.shape_cast %138 : vector<1x8x128xf32> to vector<8x128xf32>
    %c21_114 = arith.constant 21 : index
    %c0_115 = arith.constant 0 : index
    %c0_116 = arith.constant 0 : index
    %140 = vector.load %arg3[%c21_114, %c0_115, %c0_116] : memref<30x8x128xf32, #tpu.memory_space<vmem>>, vector<1x8x128xf32>
    %141 = vector.shape_cast %140 : vector<1x8x128xf32> to vector<8x128xf32>
    %142 = arith.subf %139, %141 : vector<8x128xf32>
    %143 = arith.mulf %142, %142 : vector<8x128xf32>
    %144 = arith.addf %137, %143 : vector<8x128xf32>
    %c22 = arith.constant 22 : index
    %c0_117 = arith.constant 0 : index
    %c0_118 = arith.constant 0 : index
    %145 = vector.load %arg2[%c22, %c0_117, %c0_118] : memref<30x8x128xf32, #tpu.memory_space<vmem>>, vector<1x8x128xf32>
    %146 = vector.shape_cast %145 : vector<1x8x128xf32> to vector<8x128xf32>
    %c22_119 = arith.constant 22 : index
    %c0_120 = arith.constant 0 : index
    %c0_121 = arith.constant 0 : index
    %147 = vector.load %arg3[%c22_119, %c0_120, %c0_121] : memref<30x8x128xf32, #tpu.memory_space<vmem>>, vector<1x8x128xf32>
    %148 = vector.shape_cast %147 : vector<1x8x128xf32> to vector<8x128xf32>
    %149 = arith.subf %146, %148 : vector<8x128xf32>
    %150 = arith.mulf %149, %149 : vector<8x128xf32>
    %151 = arith.addf %144, %150 : vector<8x128xf32>
    %c23 = arith.constant 23 : index
    %c0_122 = arith.constant 0 : index
    %c0_123 = arith.constant 0 : index
    %152 = vector.load %arg2[%c23, %c0_122, %c0_123] : memref<30x8x128xf32, #tpu.memory_space<vmem>>, vector<1x8x128xf32>
    %153 = vector.shape_cast %152 : vector<1x8x128xf32> to vector<8x128xf32>
    %c23_124 = arith.constant 23 : index
    %c0_125 = arith.constant 0 : index
    %c0_126 = arith.constant 0 : index
    %154 = vector.load %arg3[%c23_124, %c0_125, %c0_126] : memref<30x8x128xf32, #tpu.memory_space<vmem>>, vector<1x8x128xf32>
    %155 = vector.shape_cast %154 : vector<1x8x128xf32> to vector<8x128xf32>
    %156 = arith.subf %153, %155 : vector<8x128xf32>
    %157 = arith.mulf %156, %156 : vector<8x128xf32>
    %158 = arith.addf %151, %157 : vector<8x128xf32>
    %c24 = arith.constant 24 : index
    %c0_127 = arith.constant 0 : index
    %c0_128 = arith.constant 0 : index
    %159 = vector.load %arg2[%c24, %c0_127, %c0_128] : memref<30x8x128xf32, #tpu.memory_space<vmem>>, vector<1x8x128xf32>
    %160 = vector.shape_cast %159 : vector<1x8x128xf32> to vector<8x128xf32>
    %c24_129 = arith.constant 24 : index
    %c0_130 = arith.constant 0 : index
    %c0_131 = arith.constant 0 : index
    %161 = vector.load %arg3[%c24_129, %c0_130, %c0_131] : memref<30x8x128xf32, #tpu.memory_space<vmem>>, vector<1x8x128xf32>
    %162 = vector.shape_cast %161 : vector<1x8x128xf32> to vector<8x128xf32>
    %163 = arith.subf %160, %162 : vector<8x128xf32>
    %164 = arith.mulf %163, %163 : vector<8x128xf32>
    %165 = arith.addf %158, %164 : vector<8x128xf32>
    %c25 = arith.constant 25 : index
    %c0_132 = arith.constant 0 : index
    %c0_133 = arith.constant 0 : index
    %166 = vector.load %arg2[%c25, %c0_132, %c0_133] : memref<30x8x128xf32, #tpu.memory_space<vmem>>, vector<1x8x128xf32>
    %167 = vector.shape_cast %166 : vector<1x8x128xf32> to vector<8x128xf32>
    %c25_134 = arith.constant 25 : index
    %c0_135 = arith.constant 0 : index
    %c0_136 = arith.constant 0 : index
    %168 = vector.load %arg3[%c25_134, %c0_135, %c0_136] : memref<30x8x128xf32, #tpu.memory_space<vmem>>, vector<1x8x128xf32>
    %169 = vector.shape_cast %168 : vector<1x8x128xf32> to vector<8x128xf32>
    %170 = arith.subf %167, %169 : vector<8x128xf32>
    %171 = arith.mulf %170, %170 : vector<8x128xf32>
    %172 = arith.addf %165, %171 : vector<8x128xf32>
    %c26 = arith.constant 26 : index
    %c0_137 = arith.constant 0 : index
    %c0_138 = arith.constant 0 : index
    %173 = vector.load %arg2[%c26, %c0_137, %c0_138] : memref<30x8x128xf32, #tpu.memory_space<vmem>>, vector<1x8x128xf32>
    %174 = vector.shape_cast %173 : vector<1x8x128xf32> to vector<8x128xf32>
    %c26_139 = arith.constant 26 : index
    %c0_140 = arith.constant 0 : index
    %c0_141 = arith.constant 0 : index
    %175 = vector.load %arg3[%c26_139, %c0_140, %c0_141] : memref<30x8x128xf32, #tpu.memory_space<vmem>>, vector<1x8x128xf32>
    %176 = vector.shape_cast %175 : vector<1x8x128xf32> to vector<8x128xf32>
    %177 = arith.subf %174, %176 : vector<8x128xf32>
    %178 = arith.mulf %177, %177 : vector<8x128xf32>
    %179 = arith.addf %172, %178 : vector<8x128xf32>
    %c27 = arith.constant 27 : index
    %c0_142 = arith.constant 0 : index
    %c0_143 = arith.constant 0 : index
    %180 = vector.load %arg2[%c27, %c0_142, %c0_143] : memref<30x8x128xf32, #tpu.memory_space<vmem>>, vector<1x8x128xf32>
    %181 = vector.shape_cast %180 : vector<1x8x128xf32> to vector<8x128xf32>
    %c27_144 = arith.constant 27 : index
    %c0_145 = arith.constant 0 : index
    %c0_146 = arith.constant 0 : index
    %182 = vector.load %arg3[%c27_144, %c0_145, %c0_146] : memref<30x8x128xf32, #tpu.memory_space<vmem>>, vector<1x8x128xf32>
    %183 = vector.shape_cast %182 : vector<1x8x128xf32> to vector<8x128xf32>
    %184 = arith.subf %181, %183 : vector<8x128xf32>
    %185 = arith.mulf %184, %184 : vector<8x128xf32>
    %186 = arith.addf %179, %185 : vector<8x128xf32>
    %c28 = arith.constant 28 : index
    %c0_147 = arith.constant 0 : index
    %c0_148 = arith.constant 0 : index
    %187 = vector.load %arg2[%c28, %c0_147, %c0_148] : memref<30x8x128xf32, #tpu.memory_space<vmem>>, vector<1x8x128xf32>
    %188 = vector.shape_cast %187 : vector<1x8x128xf32> to vector<8x128xf32>
    %c28_149 = arith.constant 28 : index
    %c0_150 = arith.constant 0 : index
    %c0_151 = arith.constant 0 : index
    %189 = vector.load %arg3[%c28_149, %c0_150, %c0_151] : memref<30x8x128xf32, #tpu.memory_space<vmem>>, vector<1x8x128xf32>
    %190 = vector.shape_cast %189 : vector<1x8x128xf32> to vector<8x128xf32>
    %191 = arith.subf %188, %190 : vector<8x128xf32>
    %192 = arith.mulf %191, %191 : vector<8x128xf32>
    %193 = arith.addf %186, %192 : vector<8x128xf32>
    %c29 = arith.constant 29 : index
    %c0_152 = arith.constant 0 : index
    %c0_153 = arith.constant 0 : index
    %194 = vector.load %arg2[%c29, %c0_152, %c0_153] : memref<30x8x128xf32, #tpu.memory_space<vmem>>, vector<1x8x128xf32>
    %195 = vector.shape_cast %194 : vector<1x8x128xf32> to vector<8x128xf32>
    %c29_154 = arith.constant 29 : index
    %c0_155 = arith.constant 0 : index
    %c0_156 = arith.constant 0 : index
    %196 = vector.load %arg3[%c29_154, %c0_155, %c0_156] : memref<30x8x128xf32, #tpu.memory_space<vmem>>, vector<1x8x128xf32>
    %197 = vector.shape_cast %196 : vector<1x8x128xf32> to vector<8x128xf32>
    %198 = arith.subf %195, %197 : vector<8x128xf32>
    %199 = arith.mulf %198, %198 : vector<8x128xf32>
    %200 = arith.addf %193, %199 : vector<8x128xf32>
    %cst_157 = arith.constant 0.000000e+00 : f32
    %201 = vector.broadcast %cst_157 : f32 to vector<8x128xf32>
    %202 = arith.select %44, %200, %201 : vector<8x128xi1>, vector<8x128xf32>
    %203 = arith.addf %59, %202 : vector<8x128xf32>
    %cst_158 = arith.constant 0.142857149 : f32
    %204 = vector.broadcast %cst_158 : f32 to vector<8x128xf32>
    %205 = arith.mulf %4, %204 : vector<8x128xf32>
    %cst_159 = arith.constant 0.142857149 : f32
    %206 = vector.broadcast %cst_159 : f32 to vector<8x128xf32>
    %207 = arith.mulf %6, %206 : vector<8x128xf32>
    %cst_160 = arith.constant 5.000000e-01 : f32
    %208 = vector.broadcast %cst_160 : f32 to vector<8x128xf32>
    %209 = arith.mulf %208, %8 : vector<8x128xf32>
    %cst_161 = arith.constant 5.000000e-01 : f32
    %210 = vector.broadcast %cst_161 : f32 to vector<8x128xf32>
    %211 = arith.mulf %210, %10 : vector<8x128xf32>
    %212 = arith.subf %205, %209 : vector<8x128xf32>
    %213 = arith.subf %207, %211 : vector<8x128xf32>
    %214 = arith.addf %205, %209 : vector<8x128xf32>
    %215 = arith.addf %207, %211 : vector<8x128xf32>
    %216 = arith.subf %214, %212 : vector<8x128xf32>
    %217 = arith.subf %215, %213 : vector<8x128xf32>
    %218 = arith.mulf %216, %217 : vector<8x128xf32>
    %cst_162 = arith.constant 0.142857149 : f32
    %219 = vector.broadcast %cst_162 : f32 to vector<8x128xf32>
    %220 = arith.mulf %14, %219 : vector<8x128xf32>
    %cst_163 = arith.constant 0.142857149 : f32
    %221 = vector.broadcast %cst_163 : f32 to vector<8x128xf32>
    %222 = arith.mulf %16, %221 : vector<8x128xf32>
    %cst_164 = arith.constant 5.000000e-01 : f32
    %223 = vector.broadcast %cst_164 : f32 to vector<8x128xf32>
    %224 = arith.mulf %223, %18 : vector<8x128xf32>
    %cst_165 = arith.constant 5.000000e-01 : f32
    %225 = vector.broadcast %cst_165 : f32 to vector<8x128xf32>
    %226 = arith.mulf %225, %20 : vector<8x128xf32>
    %227 = arith.subf %220, %224 : vector<8x128xf32>
    %228 = arith.subf %222, %226 : vector<8x128xf32>
    %229 = arith.addf %220, %224 : vector<8x128xf32>
    %230 = arith.addf %222, %226 : vector<8x128xf32>
    %231 = arith.subf %229, %227 : vector<8x128xf32>
    %232 = arith.subf %230, %228 : vector<8x128xf32>
    %233 = arith.mulf %231, %232 : vector<8x128xf32>
    %cst_166 = arith.constant 0.142857149 : f32
    %234 = vector.broadcast %cst_166 : f32 to vector<8x128xf32>
    %235 = arith.mulf %24, %234 : vector<8x128xf32>
    %cst_167 = arith.constant 0.142857149 : f32
    %236 = vector.broadcast %cst_167 : f32 to vector<8x128xf32>
    %237 = arith.mulf %26, %236 : vector<8x128xf32>
    %cst_168 = arith.constant 5.000000e-01 : f32
    %238 = vector.broadcast %cst_168 : f32 to vector<8x128xf32>
    %239 = arith.mulf %238, %28 : vector<8x128xf32>
    %cst_169 = arith.constant 5.000000e-01 : f32
    %240 = vector.broadcast %cst_169 : f32 to vector<8x128xf32>
    %241 = arith.mulf %240, %30 : vector<8x128xf32>
    %242 = arith.subf %235, %239 : vector<8x128xf32>
    %243 = arith.subf %237, %241 : vector<8x128xf32>
    %244 = arith.addf %235, %239 : vector<8x128xf32>
    %245 = arith.addf %237, %241 : vector<8x128xf32>
    %246 = arith.subf %244, %242 : vector<8x128xf32>
    %247 = arith.subf %245, %243 : vector<8x128xf32>
    %248 = arith.mulf %246, %247 : vector<8x128xf32>
    %cst_170 = arith.constant 0.142857149 : f32
    %249 = vector.broadcast %cst_170 : f32 to vector<8x128xf32>
    %250 = arith.mulf %34, %249 : vector<8x128xf32>
    %cst_171 = arith.constant 0.142857149 : f32
    %251 = vector.broadcast %cst_171 : f32 to vector<8x128xf32>
    %252 = arith.mulf %36, %251 : vector<8x128xf32>
    %cst_172 = arith.constant 5.000000e-01 : f32
    %253 = vector.broadcast %cst_172 : f32 to vector<8x128xf32>
    %254 = arith.mulf %253, %38 : vector<8x128xf32>
    %cst_173 = arith.constant 5.000000e-01 : f32
    %255 = vector.broadcast %cst_173 : f32 to vector<8x128xf32>
    %256 = arith.mulf %255, %40 : vector<8x128xf32>
    %257 = arith.subf %250, %254 : vector<8x128xf32>
    %258 = arith.subf %252, %256 : vector<8x128xf32>
    %259 = arith.addf %250, %254 : vector<8x128xf32>
    %260 = arith.addf %252, %256 : vector<8x128xf32>
    %261 = arith.subf %259, %257 : vector<8x128xf32>
    %262 = arith.subf %260, %258 : vector<8x128xf32>
    %263 = arith.mulf %261, %262 : vector<8x128xf32>
    %264 = arith.minimumf %214, %244 : vector<8x128xf32>
    %265 = arith.maximumf %212, %242 : vector<8x128xf32>
    %266 = arith.subf %264, %265 : vector<8x128xf32>
    %cst_174 = arith.constant 0.000000e+00 : f32
    %267 = vector.broadcast %cst_174 : f32 to vector<8x128xf32>
    %268 = arith.maximumf %266, %267 : vector<8x128xf32>
    %269 = arith.minimumf %215, %245 : vector<8x128xf32>
    %270 = arith.maximumf %213, %243 : vector<8x128xf32>
    %271 = arith.subf %269, %270 : vector<8x128xf32>
    %cst_175 = arith.constant 0.000000e+00 : f32
    %272 = vector.broadcast %cst_175 : f32 to vector<8x128xf32>
    %273 = arith.maximumf %271, %272 : vector<8x128xf32>
    %274 = arith.mulf %268, %273 : vector<8x128xf32>
    %275 = arith.addf %218, %248 : vector<8x128xf32>
    %276 = arith.subf %275, %274 : vector<8x128xf32>
    %cst_176 = arith.constant 9.99999996E-13 : f32
    %277 = vector.broadcast %cst_176 : f32 to vector<8x128xf32>
    %278 = arith.maximumf %276, %277 : vector<8x128xf32>
    %279 = arith.divf %274, %278 : vector<8x128xf32>
    %280 = arith.minimumf %214, %259 : vector<8x128xf32>
    %281 = arith.maximumf %212, %257 : vector<8x128xf32>
    %282 = arith.subf %280, %281 : vector<8x128xf32>
    %cst_177 = arith.constant 0.000000e+00 : f32
    %283 = vector.broadcast %cst_177 : f32 to vector<8x128xf32>
    %284 = arith.maximumf %282, %283 : vector<8x128xf32>
    %285 = arith.minimumf %215, %260 : vector<8x128xf32>
    %286 = arith.maximumf %213, %258 : vector<8x128xf32>
    %287 = arith.subf %285, %286 : vector<8x128xf32>
    %cst_178 = arith.constant 0.000000e+00 : f32
    %288 = vector.broadcast %cst_178 : f32 to vector<8x128xf32>
    %289 = arith.maximumf %287, %288 : vector<8x128xf32>
    %290 = arith.mulf %284, %289 : vector<8x128xf32>
    %291 = arith.addf %218, %263 : vector<8x128xf32>
    %292 = arith.subf %291, %290 : vector<8x128xf32>
    %cst_179 = arith.constant 9.99999996E-13 : f32
    %293 = vector.broadcast %cst_179 : f32 to vector<8x128xf32>
    %294 = arith.maximumf %292, %293 : vector<8x128xf32>
    %295 = arith.divf %290, %294 : vector<8x128xf32>
    %296 = arith.minimumf %229, %244 : vector<8x128xf32>
    %297 = arith.maximumf %227, %242 : vector<8x128xf32>
    %298 = arith.subf %296, %297 : vector<8x128xf32>
    %cst_180 = arith.constant 0.000000e+00 : f32
    %299 = vector.broadcast %cst_180 : f32 to vector<8x128xf32>
    %300 = arith.maximumf %298, %299 : vector<8x128xf32>
    %301 = arith.minimumf %230, %245 : vector<8x128xf32>
    %302 = arith.maximumf %228, %243 : vector<8x128xf32>
    %303 = arith.subf %301, %302 : vector<8x128xf32>
    %cst_181 = arith.constant 0.000000e+00 : f32
    %304 = vector.broadcast %cst_181 : f32 to vector<8x128xf32>
    %305 = arith.maximumf %303, %304 : vector<8x128xf32>
    %306 = arith.mulf %300, %305 : vector<8x128xf32>
    %307 = arith.addf %233, %248 : vector<8x128xf32>
    %308 = arith.subf %307, %306 : vector<8x128xf32>
    %cst_182 = arith.constant 9.99999996E-13 : f32
    %309 = vector.broadcast %cst_182 : f32 to vector<8x128xf32>
    %310 = arith.maximumf %308, %309 : vector<8x128xf32>
    %311 = arith.divf %306, %310 : vector<8x128xf32>
    %312 = arith.minimumf %229, %259 : vector<8x128xf32>
    %313 = arith.maximumf %227, %257 : vector<8x128xf32>
    %314 = arith.subf %312, %313 : vector<8x128xf32>
    %cst_183 = arith.constant 0.000000e+00 : f32
    %315 = vector.broadcast %cst_183 : f32 to vector<8x128xf32>
    %316 = arith.maximumf %314, %315 : vector<8x128xf32>
    %317 = arith.minimumf %230, %260 : vector<8x128xf32>
    %318 = arith.maximumf %228, %258 : vector<8x128xf32>
    %319 = arith.subf %317, %318 : vector<8x128xf32>
    %cst_184 = arith.constant 0.000000e+00 : f32
    %320 = vector.broadcast %cst_184 : f32 to vector<8x128xf32>
    %321 = arith.maximumf %319, %320 : vector<8x128xf32>
    %322 = arith.mulf %316, %321 : vector<8x128xf32>
    %323 = arith.addf %233, %263 : vector<8x128xf32>
    %324 = arith.subf %323, %322 : vector<8x128xf32>
    %cst_185 = arith.constant 9.99999996E-13 : f32
    %325 = vector.broadcast %cst_185 : f32 to vector<8x128xf32>
    %326 = arith.maximumf %324, %325 : vector<8x128xf32>
    %327 = arith.divf %322, %326 : vector<8x128xf32>
    %c0_i32_186 = arith.constant 0 : i32
    %328 = vector.broadcast %c0_i32_186 : i32 to vector<8x128xi32>
    %329 = arith.cmpf ogt, %311, %279 : vector<8x128xf32>
    %c1_i32 = arith.constant 1 : i32
    %330 = vector.broadcast %c1_i32 : i32 to vector<8x128xi32>
    %331 = arith.select %329, %330, %328 : vector<8x128xi1>, vector<8x128xi32>
    %332 = arith.select %329, %311, %279 : vector<8x128xi1>, vector<8x128xf32>
    %c0_i32_187 = arith.constant 0 : i32
    %333 = vector.broadcast %c0_i32_187 : i32 to vector<8x128xi32>
    %334 = arith.cmpf ogt, %327, %295 : vector<8x128xf32>
    %c1_i32_188 = arith.constant 1 : i32
    %335 = vector.broadcast %c1_i32_188 : i32 to vector<8x128xi32>
    %336 = arith.select %334, %335, %333 : vector<8x128xi1>, vector<8x128xi32>
    %c0_i32_189 = arith.constant 0 : i32
    %337 = vector.broadcast %c0_i32_189 : i32 to vector<8x128xi32>
    %338 = arith.cmpi eq, %331, %337 : vector<8x128xi32>
    %c0_i32_190 = arith.constant 0 : i32
    %339 = vector.broadcast %c0_i32_190 : i32 to vector<8x128xi32>
    %340 = arith.cmpi eq, %336, %339 : vector<8x128xi32>
    %341 = arith.ori %338, %340 : vector<8x128xi1>
    %342 = arith.andi %44, %341 : vector<8x128xi1>
    %c0_i32_191 = arith.constant 0 : i32
    %343 = vector.broadcast %c0_i32_191 : i32 to vector<8x128xi32>
    %344 = arith.cmpi eq, %331, %343 : vector<8x128xi32>
    %cst_192 = arith.constant 0.000000e+00 : f32
    %345 = vector.broadcast %cst_192 : f32 to vector<8x128xf32>
    %346 = arith.select %344, %332, %345 : vector<8x128xi1>, vector<8x128xf32>
    %cst_193 = arith.constant 1.000000e+00 : f32
    %347 = vector.broadcast %cst_193 : f32 to vector<8x128xf32>
    %348 = arith.select %342, %8, %347 : vector<8x128xi1>, vector<8x128xf32>
    %349 = math.sqrt %348 : vector<8x128xf32>
    %cst_194 = arith.constant 1.000000e+00 : f32
    %350 = vector.broadcast %cst_194 : f32 to vector<8x128xf32>
    %351 = arith.select %342, %10, %350 : vector<8x128xi1>, vector<8x128xf32>
    %352 = math.sqrt %351 : vector<8x128xf32>
    %cst_195 = arith.constant 1.000000e+00 : f32
    %353 = vector.broadcast %cst_195 : f32 to vector<8x128xf32>
    %354 = arith.select %342, %28, %353 : vector<8x128xi1>, vector<8x128xf32>
    %355 = math.sqrt %354 : vector<8x128xf32>
    %cst_196 = arith.constant 1.000000e+00 : f32
    %356 = vector.broadcast %cst_196 : f32 to vector<8x128xf32>
    %357 = arith.select %342, %30, %356 : vector<8x128xi1>, vector<8x128xf32>
    %358 = math.sqrt %357 : vector<8x128xf32>
    %359 = arith.subf %4, %24 : vector<8x128xf32>
    %360 = arith.mulf %359, %359 : vector<8x128xf32>
    %361 = arith.subf %6, %26 : vector<8x128xf32>
    %362 = arith.mulf %361, %361 : vector<8x128xf32>
    %363 = arith.addf %360, %362 : vector<8x128xf32>
    %364 = arith.subf %349, %355 : vector<8x128xf32>
    %365 = arith.mulf %364, %364 : vector<8x128xf32>
    %366 = arith.addf %363, %365 : vector<8x128xf32>
    %367 = arith.subf %352, %358 : vector<8x128xf32>
    %368 = arith.mulf %367, %367 : vector<8x128xf32>
    %369 = arith.addf %366, %368 : vector<8x128xf32>
    %370 = arith.subf %12, %346 : vector<8x128xf32>
    %371 = arith.mulf %370, %370 : vector<8x128xf32>
    %cst_197 = arith.constant 5.000000e+00 : f32
    %372 = vector.broadcast %cst_197 : f32 to vector<8x128xf32>
    %373 = arith.mulf %372, %369 : vector<8x128xf32>
    %374 = arith.addf %373, %371 : vector<8x128xf32>
    %cst_198 = arith.constant 0.000000e+00 : f32
    %375 = vector.broadcast %cst_198 : f32 to vector<8x128xf32>
    %376 = arith.select %342, %374, %375 : vector<8x128xi1>, vector<8x128xf32>
    %377 = arith.addf %203, %376 : vector<8x128xf32>
    %c1_i32_199 = arith.constant 1 : i32
    %378 = vector.broadcast %c1_i32_199 : i32 to vector<8x128xi32>
    %379 = arith.cmpi eq, %331, %378 : vector<8x128xi32>
    %c1_i32_200 = arith.constant 1 : i32
    %380 = vector.broadcast %c1_i32_200 : i32 to vector<8x128xi32>
    %381 = arith.cmpi eq, %336, %380 : vector<8x128xi32>
    %382 = arith.ori %379, %381 : vector<8x128xi1>
    %383 = arith.andi %44, %382 : vector<8x128xi1>
    %c1_i32_201 = arith.constant 1 : i32
    %384 = vector.broadcast %c1_i32_201 : i32 to vector<8x128xi32>
    %385 = arith.cmpi eq, %331, %384 : vector<8x128xi32>
    %cst_202 = arith.constant 0.000000e+00 : f32
    %386 = vector.broadcast %cst_202 : f32 to vector<8x128xf32>
    %387 = arith.select %385, %332, %386 : vector<8x128xi1>, vector<8x128xf32>
    %cst_203 = arith.constant 1.000000e+00 : f32
    %388 = vector.broadcast %cst_203 : f32 to vector<8x128xf32>
    %389 = arith.select %383, %18, %388 : vector<8x128xi1>, vector<8x128xf32>
    %390 = math.sqrt %389 : vector<8x128xf32>
    %cst_204 = arith.constant 1.000000e+00 : f32
    %391 = vector.broadcast %cst_204 : f32 to vector<8x128xf32>
    %392 = arith.select %383, %20, %391 : vector<8x128xi1>, vector<8x128xf32>
    %393 = math.sqrt %392 : vector<8x128xf32>
    %cst_205 = arith.constant 1.000000e+00 : f32
    %394 = vector.broadcast %cst_205 : f32 to vector<8x128xf32>
    %395 = arith.select %383, %38, %394 : vector<8x128xi1>, vector<8x128xf32>
    %396 = math.sqrt %395 : vector<8x128xf32>
    %cst_206 = arith.constant 1.000000e+00 : f32
    %397 = vector.broadcast %cst_206 : f32 to vector<8x128xf32>
    %398 = arith.select %383, %40, %397 : vector<8x128xi1>, vector<8x128xf32>
    %399 = math.sqrt %398 : vector<8x128xf32>
    %400 = arith.subf %14, %34 : vector<8x128xf32>
    %401 = arith.mulf %400, %400 : vector<8x128xf32>
    %402 = arith.subf %16, %36 : vector<8x128xf32>
    %403 = arith.mulf %402, %402 : vector<8x128xf32>
    %404 = arith.addf %401, %403 : vector<8x128xf32>
    %405 = arith.subf %390, %396 : vector<8x128xf32>
    %406 = arith.mulf %405, %405 : vector<8x128xf32>
    %407 = arith.addf %404, %406 : vector<8x128xf32>
    %408 = arith.subf %393, %399 : vector<8x128xf32>
    %409 = arith.mulf %408, %408 : vector<8x128xf32>
    %410 = arith.addf %407, %409 : vector<8x128xf32>
    %411 = arith.subf %22, %387 : vector<8x128xf32>
    %412 = arith.mulf %411, %411 : vector<8x128xf32>
    %cst_207 = arith.constant 5.000000e+00 : f32
    %413 = vector.broadcast %cst_207 : f32 to vector<8x128xf32>
    %414 = arith.mulf %413, %410 : vector<8x128xf32>
    %415 = arith.addf %414, %412 : vector<8x128xf32>
    %cst_208 = arith.constant 0.000000e+00 : f32
    %416 = vector.broadcast %cst_208 : f32 to vector<8x128xf32>
    %417 = arith.select %383, %415, %416 : vector<8x128xi1>, vector<8x128xf32>
    %418 = arith.addf %377, %417 : vector<8x128xf32>
    %c0_209 = arith.constant 0 : index
    %c0_210 = arith.constant 0 : index
    %419 = vector.load %arg5[%c0_209, %c0_210] : memref<8x128xf32, #tpu.memory_space<vmem>>, vector<8x128xf32>
    %420 = arith.addf %419, %418 : vector<8x128xf32>
    %c0_211 = arith.constant 0 : index
    %c0_212 = arith.constant 0 : index
    %421 = vector.load %arg5[%c0_211, %c0_212] : memref<8x128xf32, #tpu.memory_space<vmem>>, vector<8x128xf32>
    tpu.vector_store %arg5[%c0_211, %c0_212], %420 {strides = array<i32>} : memref<8x128xf32, #tpu.memory_space<vmem>>, vector<8x128xf32>,
    %c0_i32_213 = arith.constant 0 : i32
    %422 = arith.cmpi eq, %arg1, %c0_i32_213 : i32
    %423 = arith.extui %422 : i1 to i32
    %c0_i32_214 = arith.constant 0 : i32
    %424 = arith.cmpi ne, %423, %c0_i32_214 : i32
    scf.if %424 {
      %cst_215 = arith.constant 0.000000e+00 : f32
      %425 = vector.broadcast %cst_215 : f32 to vector<1x1x1xf32>
      %c0_216 = arith.constant 0 : index
      %c0_217 = arith.constant 0 : index
      %426 = vector.load %arg5[%c0_216, %c0_217] : memref<8x128xf32, #tpu.memory_space<vmem>>, vector<8x128xf32>
      %427 = vector.shape_cast %426 : vector<8x128xf32> to vector<1x8x128xf32>
      %cst_218 = arith.constant dense<0.000000e+00> : vector<1xf32>
      %428 = vector.multi_reduction <add>, %427, %cst_218 [1, 2] : vector<1x8x128xf32> to vector<1xf32>
      %429 = vector.shape_cast %428 : vector<1xf32> to vector<1x1x1xf32>
      %430 = vector.extract %429[0, 0, 0] : f32 from vector<1x1x1xf32>
      %431 = vector.broadcast %430 : f32 to vector<1x1x1xf32>
      %432 = arith.addf %425, %431 : vector<1x1x1xf32>
      %c0_219 = arith.constant 0 : index
      %c0_220 = arith.constant 0 : index
      %c0_221 = arith.constant 0 : index
      %433 = vector.load %arg4[%c0_219, %c0_220, %c0_221] : memref<1x1x1xf32, #tpu.memory_space<vmem>>, vector<1x1x1xf32>
      tpu.vector_store %arg4[%c0_219, %c0_220, %c0_221], %432 {strides = array<i32>} : memref<1x1x1xf32, #tpu.memory_space<vmem>>, vector<1x1x1xf32>,
    } else {
    }
    return
  }
  func.func @transform_0(%arg0: i32, %arg1: i32) -> (i32, i32, i32) {
    %c1_i32 = arith.constant 1 : i32
    %0 = arith.muli %arg0, %c1_i32 : i32
    %1 = arith.addi %0, %arg1 : i32
    %c0_i32 = arith.constant 0 : i32
    %c0_i32_0 = arith.constant 0 : i32
    %c0_i32_1 = arith.constant 0 : i32
    return %c0_i32, %1, %c0_i32_0 : i32, i32, i32
  }
  func.func @transform_1(%arg0: i32, %arg1: i32) -> (i32, i32, i32) {
    %c1_i32 = arith.constant 1 : i32
    %0 = arith.muli %arg0, %c1_i32 : i32
    %1 = arith.addi %0, %arg1 : i32
    %c0_i32 = arith.constant 0 : i32
    %c0_i32_0 = arith.constant 0 : i32
    %c0_i32_1 = arith.constant 0 : i32
    return %c0_i32, %1, %c0_i32_0 : i32, i32, i32
  }
  func.func @transform_2(%arg0: i32, %arg1: i32) -> (i32, i32, i32) {
    %c0_i32 = arith.constant 0 : i32
    %c0_i32_0 = arith.constant 0 : i32
    %c0_i32_1 = arith.constant 0 : i32
    return %arg0, %c0_i32, %c0_i32_0 : i32, i32, i32
  }
}

</mosaic_0001>

<bundles_post_ra>
// kernel: tpu_custom_call.1
= control target key start
LH: loop header
LB: loop body
LE: loop exit
PB: predicated region body
PF: predicated region fallthrough
CT: control target
= control target key end

     0   :  { %7 = vsyncpa [#allocation4], 0  ;;  %s960_s0 = inlined_call_operand.hbm [shape: f32[30,8,128], index: 0, kind: input, shape index: {}]   ;;  %s961_s1 = inlined_call_operand.hbm [shape: f32[30,8,128], index: 1, kind: input, shape index: {}]   ;;  %s962_s2 = inlined_call_operand.hbm [shape: f32[1,1,1], index: 2, kind: output, shape index: {}]  }
   0x1   :  { %8 = vsyncpa [#allocation7], 0 }
   0x2   :  { %9 = vsyncpa [#allocation5], 0  ;;  %s598_s9 = smov [#allocation3]   ;;  %s526_s13 = scalar_lea.hbm %s960_s0, 3840 }
   0x3   :  { %s18_s10 = sshll.u32 %s598_s9, 4  ;;  %p527_p0 = scmp.ne.s32.totalorder %s960_s0, %s526_s13  ;;  %s19_s10 = int_to_ptr.vmem [resolvable:$true] %s18_s10 }
   0x4   :  { %p530_p1 = scmp.lt.u32.totalorder %s526_s13, %s960_s0 }
   0x6   :  { %p532_p2 = pnand %p530_p1, %p527_p0 }
   0x8   :  { %535 = shalt.err (!%p532_p2)
}
   0x9   :  { %s536_s18 = scalar_lea.vmem %s19_s10, 3840  ;;  %p541_p4 = scmp.lt.s32.totalorder %s19_s10, %s19_s10 }
   0xa   :  { %p537_p3 = scmp.ne.s32.totalorder %s19_s10, %s536_s18  ;;  %p542_p5 = scmp.lt.s32.totalorder %s536_s18, %s536_s18 }
   0xc   :  { %p543_p6 = por %p542_p5, %p541_p4 }
   0xe   :  { %p544_p7 = pnand %p543_p6, %p537_p3 }
  0x10   :  { %547 = shalt.err (!%p544_p7)
}
  0x11   :  { %s599_s19 = smov 128   ;;  %s600_s20 = smov 8  }
  0x12   :  { %24 = dma.hbm_to_vmem [thread:$0]  %s960_s0, 3840, %s19_s10, [#allocation4], %s599_s19, %s599_s19, %s600_s20  }
  0x13   :  { %s601_s23 = smov [#allocation6]   ;;  %s548_s27 = scalar_lea.hbm %s961_s1, 3840 }
  0x14   :  { %s33_s24 = sshll.u32 %s601_s23, 4  ;;  %p549_p8 = scmp.ne.s32.totalorder %s961_s1, %s548_s27  ;;  %s34_s24 = int_to_ptr.vmem [resolvable:$true] %s33_s24 }
  0x15   :  { %p552_p9 = scmp.lt.u32.totalorder %s548_s27, %s961_s1 }
  0x17   :  { %p554_p10 = pnand %p552_p9, %p549_p8 }
  0x19   :  { %557 = shalt.err (!%p554_p10)
}
  0x1a   :  { %s558_s4 = scalar_lea.vmem %s34_s24, 3840  ;;  %p563_p12 = scmp.lt.s32.totalorder %s34_s24, %s34_s24 }
  0x1b   :  { %p559_p11 = scmp.ne.s32.totalorder %s34_s24, %s558_s4  ;;  %p564_p13 = scmp.lt.s32.totalorder %s558_s4, %s558_s4 }
  0x1d   :  { %p565_p0 = por %p564_p13, %p563_p12 }
  0x1f   :  { %p566_p1 = pnand %p565_p0, %p559_p11 }
  0x21   :  { %569 = shalt.err (!%p566_p1)
}
  0x22   :  { %39 = dma.hbm_to_vmem [thread:$0]  %s961_s1, 3840, %s34_s24, [#allocation7], %s599_s19, %s599_s19, %s600_s20  }
  0x23   :  { %592 = dma.done.wait [#allocation4], 3840  }
  0x24   :  { %593 = vsyncadd [#allocation4], 4294963456 }
  0x25   :  { %594 = dma.done.wait [#allocation7], 3840  }
  0x26   :  { %595 = vsyncadd [#allocation7], 4294963456  ;;  %v642_v0 = vld [vmem:[#allocation3] sm:$0xff]  ;;  %v644_v1 = vld [vmem:[#allocation3 + $0x10] sm:$0xff]  ;;  %s602_s1 = smov [#allocation8]  }
  0x27   :  { %v646_v2 = vld [vmem:[#allocation3 + $0x8] sm:$0xff]  ;;  %v648_v3 = vld [vmem:[#allocation3 + $0x18] sm:$0xff]  ;;  %v244_v5 = vmul.f32 0.14285715, %v642_v0  ;;  %v246_v6 = vmul.f32 0.5, %v644_v1  ;;  %v654_v7 = vld [vmem:[#allocation3 + $0x30] sm:$0xff] }
  0x28   :  { %v650_v4 = vld [vmem:[#allocation3 + $0x28] sm:$0xff]  ;;  %v656_v8 = vld [vmem:[#allocation3 + $0x38] sm:$0xff]  ;;  %v658_v9 = vld [vmem:[#allocation3 + $0x40] sm:$0xff]  ;;  %v245_v19 = vmul.f32 0.14285715, %v646_v2  ;;  %v247_v24 = vmul.f32 0.5, %v648_v3 }
  0x29   :  { %v103_v10 = vld [vmem:[#allocation3 + $0x50] sm:$0xff]  ;;  %v105_v11 = vld [vmem:[#allocation6 + $0x50] sm:$0xff]  ;;  %v110_v12 = vld [vmem:[#allocation3 + $0x58] sm:$0xff]  ;;  %v662_v25 = vsub.f32 %v244_v5, %v246_v6  ;;  %v255_v26 = vmul.f32 0.14285715, %v650_v4  ;;  %v257_v35 = vmul.f32 0.5, %v656_v8  ;;  %v668_v40 = vadd.f32 %v246_v6, %v244_v5 }
  0x2a   :  { %v112_v13 = vld [vmem:[#allocation6 + $0x58] sm:$0xff]  ;;  %v106_v14 = vsub.f32 %v103_v10, %v105_v11  ;;  %v117_v16 = vld [vmem:[#allocation3 + $0x60] sm:$0xff]  ;;  %v119_v17 = vld [vmem:[#allocation6 + $0x60] sm:$0xff]  ;;  %v256_v34 = vmul.f32 0.14285715, %v654_v7  ;;  %v258_v36 = vmul.f32 0.5, %v658_v9  ;;  %v670_v43 = vsub.f32 %v245_v19, %v247_v24 }
  0x2b   :  { %v113_v15 = vsub.f32 %v110_v12, %v112_v13  ;;  %v124_v18 = vld [vmem:[#allocation3 + $0x68] sm:$0xff]  ;;  %v120_v20 = vsub.f32 %v117_v16, %v119_v17  ;;  %v126_v21 = vld [vmem:[#allocation6 + $0x68] sm:$0xff]  ;;  %v131_v22 = vld [vmem:[#allocation3 + $0x70] sm:$0xff]  ;;  %v676_v48 = vadd.f32 %v247_v24, %v245_v19  ;;  %v252_v49 = vsub.f32 %v668_v40, %v662_v25  ;;  %s483_s6 = sshll.u32 %s602_s1, 4  ;;  %s484_s6 = int_to_ptr.vmem [resolvable:$true] %s483_s6 }
  0x2c   :  { %v133_v23 = vld [vmem:[#allocation6 + $0x70] sm:$0xff]  ;;  %v107_v27 = vmul.f32 %v106_v14, %v106_v14  ;;  %v127_v29 = vsub.f32 %v124_v18, %v126_v21  ;;  %v138_v31 = vld [vmem:[#allocation3 + $0x78] sm:$0xff]  ;;  %v140_v32 = vld [vmem:[#allocation6 + $0x78] sm:$0xff]  ;;  %v682_v53 = vsub.f32 %v255_v26, %v257_v35  ;;  %v684_v54 = vsub.f32 %v256_v34, %v258_v36  ;;  %s570_s8 = scalar_lea.vmem %s484_s6, 16  ;;  %s574_s9 = scalar_lea.vmem %s484_s6, 32 }
  0x2d   :  { %v114_v28 = vmul.f32 %v113_v15, %v113_v15  ;;  %v134_v30 = vsub.f32 %v131_v22, %v133_v23  ;;  %v121_v33 = vmul.f32 %v120_v20, %v120_v20  ;;  %v141_v39 = vsub.f32 %v138_v31, %v140_v32  ;;  %v145_v41 = vld [vmem:[#allocation3 + $0x80] sm:$0xff]  ;;  %v147_v42 = vld [vmem:[#allocation6 + $0x80] sm:$0xff]  ;;  %v680_v50 = vld [vmem:[#allocation6 + $0x8] sm:$0xff]  ;;  %p571_p2 = scmp.ne.s32.totalorder %s484_s6, %s570_s8  ;;  %p575_p3 = scmp.lt.s32.totalorder %s484_s6, %s484_s6 }
  0x2e   :  { %v128_v38 = vmul.f32 %v127_v29, %v127_v29  ;;  %v672_v44 = vld [vmem:[#allocation6] sm:$0xff]  ;;  %v674_v45 = vld [vmem:[#allocation6 + $0x10] sm:$0xff]  ;;  %v152_v51 = vld [vmem:[#allocation3 + $0x88] sm:$0xff]  ;;  %v686_v55 = vadd.f32 %v257_v35, %v255_v26  ;;  %v688_v56 = vadd.f32 %v258_v36, %v256_v34  ;;  %v148_v60 = vsub.f32 %v145_v41, %v147_v42  ;;  %p576_p4 = scmp.lt.s32.totalorder %s574_s9, %s570_s8 }
  0x2f   :  { %v115_v37 = vadd.f32 %v114_v28, %v107_v27  ;;  %v135_v47 = vmul.f32 %v134_v30, %v134_v30  ;;  %v154_v52 = vld [vmem:[#allocation6 + $0x88] sm:$0xff]  ;;  %v690_v57 = vld [vmem:[#allocation6 + $0x18] sm:$0xff]  ;;  %v142_v59 = vmul.f32 %v141_v39, %v141_v39  ;;  %v253_v61 = vsub.f32 %v676_v48, %v670_v43  ;;  %v159_v12 = vld [vmem:[#allocation3 + $0x90] sm:$0xff] }
  0x30   :  { %v263_v62 = vsub.f32 %v686_v55, %v682_v53  ;;  %v264_v63 = vsub.f32 %v688_v56, %v684_v54  ;;  %v266_v5 = vmul.f32 0.14285715, %v672_v44  ;;  %v268_v6 = vmul.f32 0.5, %v674_v45  ;;  %v161_v13 = vld [vmem:[#allocation6 + $0x90] sm:$0xff]  ;;  %v166_v15 = vld [vmem:[#allocation3 + $0x98] sm:$0xff]  ;;  %v168_v16 = vld [vmem:[#allocation6 + $0x98] sm:$0xff]  ;;  %p577_p5 = por %p576_p4, %p575_p3 }
  0x31   :  { %v122_v46 = vadd.f32 %v121_v33, %v115_v37  ;;  %v155_v11 = vsub.f32 %v152_v51, %v154_v52  ;;  %v267_v14 = vmul.f32 0.14285715, %v680_v50  ;;  %v269_v17 = vmul.f32 0.5, %v690_v57  ;;  %v702_v18 = vld [vmem:[#allocation6 + $0x28] sm:$0xff]  ;;  %v704_v19 = vld [vmem:[#allocation6 + $0x30] sm:$0xff]  ;;  %v706_v20 = vld [vmem:[#allocation6 + $0x38] sm:$0xff] }
  0x32   :  { %v149_v22 = vmul.f32 %v148_v60, %v148_v60  ;;  %v708_v23 = vld [vmem:[#allocation6 + $0x40] sm:$0xff]  ;;  %v162_v24 = vsub.f32 %v159_v12, %v161_v13  ;;  %v254_v26 = vmul.f32 %v253_v61, %v252_v49  ;;  %v710_v27 = vmul.f32 %v264_v63, %v263_v62  ;;  %v173_v42 = vld [vmem:[#allocation3 + $0xa0] sm:$0xff]  ;;  %p578_p6 = pnand %p577_p5, %p571_p2 }
  0x33   :  { %v129_v58 = vadd.f32 %v128_v38, %v122_v46  ;;  %v270_v28 = vsub.f32 %v266_v5, %v268_v6  ;;  %v156_v29 = vmul.f32 %v155_v11, %v155_v11  ;;  %v169_v30 = vsub.f32 %v166_v15, %v168_v16  ;;  %v175_v46 = vld [vmem:[#allocation6 + $0xa0] sm:$0xff]  ;;  %v180_v15 = vld [vmem:[#allocation3 + $0xa8] sm:$0xff]  ;;  %v182_v16 = vld [vmem:[#allocation6 + $0xa8] sm:$0xff] }
  0x34   :  { %v271_v31 = vsub.f32 %v267_v14, %v269_v17  ;;  %v272_v32 = vadd.f32 %v268_v6, %v266_v5  ;;  %v273_v33 = vadd.f32 %v269_v17, %v267_v14  ;;  %v277_v34 = vmul.f32 0.14285715, %v702_v18 }
  0x35   :  { %v136_v10 = vadd.f32 %v135_v47, %v129_v58  ;;  %v278_v35 = vmul.f32 0.14285715, %v704_v19  ;;  %v279_v36 = vmul.f32 0.5, %v706_v20  ;;  %v280_v39 = vmul.f32 0.5, %v708_v23 }
  0x36   :  { %v274_v38 = vsub.f32 %v272_v32, %v270_v28  ;;  %v288_v41 = vmin.f32 %v668_v40, %v272_v32  ;;  %v275_v47 = vsub.f32 %v273_v33, %v271_v31  ;;  %v289_v52 = vmax.f32 %v662_v25, %v270_v28 }
  0x37   :  { %v143_v21 = vadd.f32 %v142_v59, %v136_v10  ;;  %v281_v49 = vsub.f32 %v277_v34, %v279_v36  ;;  %v283_v51 = vadd.f32 %v279_v36, %v277_v34  ;;  %v163_v58 = vmul.f32 %v162_v24, %v162_v24 }
  0x38   :  { %v282_v59 = vsub.f32 %v278_v35, %v280_v39  ;;  %v284_v60 = vadd.f32 %v280_v39, %v278_v35  ;;  %v292_v61 = vmin.f32 %v676_v48, %v273_v33  ;;  %v276_v62 = vmul.f32 %v275_v47, %v274_v38 }
  0x39   :  { %v150_v37 = vadd.f32 %v149_v22, %v143_v21  ;;  %v285_v63 = vsub.f32 %v283_v51, %v281_v49  ;;  %v290_v5 = vsub.f32 %v288_v41, %v289_v52  ;;  %v293_v6 = vmax.f32 %v670_v43, %v271_v31 }
  0x3a   :  { %v176_v10 = vsub.f32 %v173_v42, %v175_v46  ;;  %v286_v11 = vsub.f32 %v284_v60, %v282_v59  ;;  %v302_v12 = vmin.f32 %v668_v40, %v283_v51  ;;  %v303_v13 = vmax.f32 %v662_v25, %v281_v49 }
  0x3b   :  { %v157_v14 = vadd.f32 %v156_v29, %v150_v37  ;;  %v291_v17 = vmax.f32 %v290_v5, 0.0  ;;  %v294_v21 = vsub.f32 %v292_v61, %v293_v6  ;;  %v306_v22 = vmin.f32 %v676_v48, %v284_v60 }
  0x3c   :  { %v287_v24 = vmul.f32 %v286_v11, %v285_v63  ;;  %v297_v34 = vadd.f32 %v276_v62, %v254_v26  ;;  %v304_v35 = vsub.f32 %v302_v12, %v303_v13  ;;  %v307_v36 = vmax.f32 %v670_v43, %v282_v59 }
  0x3d   :  { %v295_v38 = vmax.f32 %v294_v21, 0.0  ;;  %v316_v39 = vmin.f32 %v686_v55, %v272_v32  ;;  %v317_v41 = vmax.f32 %v682_v53, %v270_v28  ;;  %v320_v40 = vmin.f32 %v688_v56, %v273_v33 }
  0x3e   :  { %v170_v25 = vmul.f32 %v169_v30, %v169_v30  ;;  %v183_v29 = vsub.f32 %v180_v15, %v182_v16  ;;  %v305_v37 = vmax.f32 %v304_v35, 0.0  ;;  %v308_v42 = vsub.f32 %v306_v22, %v307_v36  ;;  %v189_v15 = vld [vmem:[#allocation6 + $0xb0] sm:$0xff] }
  0x3f   :  { %v164_v46 = vadd.f32 %v163_v58, %v157_v14  ;;  %v296_v47 = vmul.f32 %v295_v38, %v291_v17  ;;  %v318_v52 = vsub.f32 %v316_v39, %v317_v41  ;;  %v321_v48 = vmax.f32 %v684_v54, %v271_v31  ;;  %v187_v14 = vld [vmem:[#allocation3 + $0xb0] sm:$0xff] }
  0x40   :  { %v309_v61 = vmax.f32 %v308_v42, 0.0  ;;  %v311_v63 = vadd.f32 %v287_v24, %v254_v26  ;;  %v330_v43 = vmin.f32 %v686_v55, %v283_v51  ;;  %v331_v5 = vmax.f32 %v682_v53, %v281_v49 }
  0x41   :  { %v298_v32 = vsub.f32 %v297_v34, %v296_v47  ;;  %v319_v6 = vmax.f32 %v318_v52, 0.0  ;;  %v322_v28 = vsub.f32 %v320_v40, %v321_v48  ;;  %v334_v33 = vmin.f32 %v688_v56, %v284_v60  ;;  %v196_v34 = vld [vmem:[#allocation6 + $0xb8] sm:$0xff]  ;;  %v201_v40 = vld [vmem:[#allocation3 + $0xc0] sm:$0xff] }
  0x42   :  { %v177_v30 = vmul.f32 %v176_v10, %v176_v10  ;;  %v310_v11 = vmul.f32 %v309_v61, %v305_v37  ;;  %v332_v12 = vsub.f32 %v330_v43, %v331_v5  ;;  %v335_v58 = vmax.f32 %v684_v54, %v282_v59  ;;  %v194_v59 = vld [vmem:[#allocation3 + $0xb8] sm:$0xff]  ;;  %v215_v5 = vld [vmem:[#allocation3 + $0xd0] sm:$0xff] }
  0x43   :  { %v171_v13 = vadd.f32 %v170_v25, %v164_v46  ;;  %v299_v31 = vmax.f32 %v298_v32, 1e-12  ;;  %v323_v16 = vmax.f32 %v322_v28, 0.0  ;;  %v325_v26 = vadd.f32 %v276_v62, %v710_v27  ;;  %v203_v25 = vld [vmem:[#allocation6 + $0xc0] sm:$0xff]  ;;  %v210_v46 = vld [vmem:[#allocation6 + $0xc8] sm:$0xff]  ;;  %v217_v32 = vld [vmem:[#allocation6 + $0xd0] sm:$0xff] }
  0x44   :  { %v312_v55 = vsub.f32 %v311_v63, %v310_v11  ;;  %v333_v51 = vmax.f32 %v332_v12, 0.0  ;;  %v336_v53 = vsub.f32 %v334_v33, %v335_v58  ;;  %v190_v17 = vsub.f32 %v187_v14, %v189_v15  ;;  %v736_v33 = vld [vmem:[#allocation3 + $0x20] sm:$0xff]  ;;  %v90_v12 = vld [vmem:[#allocation6 + $0x48] sm:$0xff] }
  0x45   :  { %v324_v49 = vmul.f32 %v323_v16, %v319_v6  ;;  %v339_v56 = vadd.f32 %v287_v24, %v710_v27  ;;  %v178_v60 = vadd.f32 %v177_v30, %v171_v13  ;;  %v184_v10 = vmul.f32 %v183_v29, %v183_v29  ;;  %v208_v29 = vld [vmem:[#allocation3 + $0xc8] sm:$0xff] }
  0x46   :  { %v313_v21 = vmax.f32 %v312_v55, 1e-12  ;;  %v337_v22 = vmax.f32 %v336_v53, 0.0  ;;  %502 = vrcp.f32 %v299_v31  ;;  %v191_v39 = vmul.f32 %v190_v17, %v190_v17  ;;  %v738_v30 = vld [vmem:[#allocation3 + $0x48] sm:$0xff]  ;;  %v222_v31 = vld [vmem:[#allocation3 + $0xd8] sm:$0xff] }
  0x47   :  { %v326_v54 = vsub.f32 %v325_v26, %v324_v49  ;;  %v185_v62 = vadd.f32 %v184_v10, %v178_v60  ;;  %v197_v41 = vsub.f32 %v194_v59, %v196_v34  ;;  %v204_v24 = vsub.f32 %v201_v40, %v203_v25  ;;  %v224_v16 = vld [vmem:[#allocation6 + $0xd8] sm:$0xff] }
  0x48   :  { %v338_v35 = vmul.f32 %v337_v22, %v333_v51  ;;  %504 = vrcp.f32 %v313_v21  ;;  %v211_v63 = vsub.f32 %v208_v29, %v210_v46  ;;  %v218_v15 = vsub.f32 %v215_v5, %v217_v32  ;;  %v742_v51 = vld [vmem:[#allocation6 + $0x20] sm:$0xff]  ;;  %v229_v21 = vld [vmem:[#allocation3 + $0xe0] sm:$0xff] }
  0x49   :  { %v327_v36 = vmax.f32 %v326_v54, 1e-12  ;;  %v192_v42 = vadd.f32 %v191_v39, %v185_v62  ;;  %v198_v27 = vmul.f32 %v197_v41, %v197_v41  ;;  %v205_v61 = vmul.f32 %v204_v24, %v204_v24  ;;  %v231_v22 = vld [vmem:[#allocation6 + $0xe0] sm:$0xff] }
  0x4a   :  { %v340_v38 = vsub.f32 %v339_v56, %v338_v35  ;;  %v212_v14 = vmul.f32 %v211_v63, %v211_v63  ;;  %v96_v53 = vsub.f32 %v738_v30, %v90_v12  ;;  %vm963_vm2 = vcmp.gt.f32.partialorder %v742_v51, 0.0 }
  0x4b   :  { %506 = vrcp.f32 %v327_v36  ;;  %v199_v48 = vadd.f32 %v198_v27, %v192_v42  ;;  %v219_v60 = vmul.f32 %v218_v15, %v218_v15  ;;  %v232_v59 = vsub.f32 %v229_v21, %v231_v22  ;;  %v238_v36 = vld [vmem:[#allocation6 + $0xe8] sm:$0xff] }
  0x4c   :  { %v341_v37 = vmax.f32 %v340_v38, 1e-12  ;;  %v97_v54 = vmul.f32 %v96_v53, %v96_v53  ;;  %v386_v62 = vsub.f32 %v642_v0, %v672_v44  ;;  %v388_v39 = vsub.f32 %v646_v2, %v680_v50 }
  0x4d   :  { %v206_v13 = vadd.f32 %v205_v61, %v199_v48  ;;  %vm92_vm8 = vcmp.eq.f32.partialorder %v742_v51, 0.0  ;;  %v233_v2 = vmul.f32 %v232_v59, %v232_v59  ;;  %v442_v24 = vsub.f32 %v654_v7, %v704_v19 }
  0x4e   :  { %508 = vrcp.f32 %v341_v37  ;;  %v387_v50 = vmul.f32 %v386_v62, %v386_v62  ;;  %v389_v27 = vmul.f32 %v388_v39, %v388_v39 }
  0x4f   :  { %v213_v56 = vadd.f32 %v212_v14, %v206_v13  ;;  %v852_v48 = vmul.f32 %v442_v24, %v442_v24 }
  0x50   :  { %v503_v52 = vpop.eup %502 }
  0x51   :  { %v734_v6 = vmul.f32 %v503_v52, %v296_v47  ;;  %v93_v47 = vsub.f32 %v736_v33, %v742_v51  ;;  %v220_v41 = vadd.f32 %v219_v60, %v213_v56  ;;  %v849_v52 = vadd.f32 %v389_v27, %v387_v50 }
  0x52   :  { %v505_v43 = vpop.eup %504 }
  0x53   :  { %v315_v26 = vmul.f32 %v505_v43, %v310_v11  ;;  %v94_v10 = vmul.f32 %v93_v47, %v93_v47 }
  0x55   :  { %v507_v28 = vpop.eup %506 }
  0x56   :  { %v740_v58 = vmul.f32 %v507_v28, %v324_v49  ;;  %v225_v49 = vsub.f32 %v222_v31, %v224_v16 }
  0x58   :  { %v509_v55 = vpop.eup %508  ;;  %vm344_vm0 = vcmp.gt.f32.partialorder %v740_v58, %v734_v6  ;;  %v226_v34 = vmul.f32 %v225_v49, %v225_v49 }
  0x59   :  { %v343_v17 = vmul.f32 %v509_v55, %v338_v35  ;;  %vm752_vm1 = vmneg %vm344_vm0  ;;  %v236_v35 = vld [vmem:[#allocation3 + $0xe8] sm:$0xff] }
  0x5a   :  { %v227_v42 = vadd.f32 %v226_v34, %v220_v41 }
  0x5b   :  { %vm347_vm3 = vcmp.gt.f32.partialorder %v343_v17, %v315_v26 }
  0x5c   :  { %vm494_vm4 = vmneg %vm347_vm3 }
  0x5d   :  { %vm351_vm5 = vmor %vm752_vm1, %vm494_vm4 }
  0x5e   :  { %vm762_vm6 = vmand %vm963_vm2, %vm351_vm5 }
  0x5f   :  { %v773_v40 = vsel %vm762_vm6, %v644_v1, 1.0  ;;  %v778_v25 = vsel %vm762_vm6, %v648_v3, 1.0  ;;  %v783_v37 = vsel %vm762_vm6, %v674_v45, 1.0  ;;  %vm405_vm7 = vmor %vm344_vm0, %vm347_vm3  ;;  %v794_v0 = vsel %vm762_vm6, %v690_v57, 1.0 }
  0x60   :  { %510 = vrsqrt.f32 %v773_v40  ;;  %v98_v1 = vadd.f32 %v97_v54, %v94_v10  ;;  %v239_v3 = vsub.f32 %v236_v35, %v238_v36  ;;  %vm799_vm9 = vmand %vm963_vm2, %vm405_vm7  ;;  %v808_v45 = vsel %vm344_vm0, %v740_v58, %v734_v6 }
  0x61   :  { %512 = vrsqrt.f32 %v778_v25  ;;  %v440_v57 = vsub.f32 %v650_v4, %v702_v18  ;;  %v819_v29 = vsel %vm799_vm9, %v656_v8, 1.0  ;;  %v824_v46 = vsel %vm799_vm9, %v658_v9, 1.0 }
  0x62   :  { %514 = vrsqrt.f32 %v783_v37  ;;  %v829_v4 = vsel %vm799_vm9, %v706_v20, 1.0  ;;  %v353_v18 = vsel %vm752_vm1, %v808_v45, 0.0  ;;  %v838_v7 = vsel %vm799_vm9, %v708_v23, 1.0 }
  0x63   :  { %516 = vrsqrt.f32 %v794_v0  ;;  %v842_v8 = vsel %vm92_vm8, %v98_v1, 0.0  ;;  %v844_v9 = vmul.f32 %v239_v3, %v239_v3  ;;  %v847_v19 = vmul.f32 %v440_v57, %v440_v57 }
  0x64   :  { %518 = vrsqrt.f32 %v819_v29  ;;  %v234_v20 = vadd.f32 %v233_v2, %v227_v42  ;;  %vm357_vm10 = vcmp.eq.f32.partialorder %v773_v40, inf  ;;  %vm359_vm11 = vcmp.eq.f32.partialorder %v773_v40, 0.0 }
  0x65   :  { %520 = vrsqrt.f32 %v824_v46  ;;  %v857_v23 = vsub.f32 %v736_v33, %v353_v18  ;;  %v360_v61 = vand.u32 2147483648, %v773_v40  ;;  %vm365_vm12 = vcmp.eq.f32.partialorder %v778_v25, inf }
  0x66   :  { %522 = vrsqrt.f32 %v829_v4  ;;  %vm367_vm13 = vcmp.eq.f32.partialorder %v778_v25, 0.0  ;;  %v368_v63 = vand.u32 2147483648, %v778_v25  ;;  %vm373_vm14 = vcmp.eq.f32.partialorder %v783_v37, inf }
  0x67   :  { %524 = vrsqrt.f32 %v838_v7  ;;  %vm375_vm15 = vcmp.eq.f32.partialorder %v783_v37, 0.0  ;;  %v376_v5 = vand.u32 2147483648, %v783_v37  ;;  %vm381_vm1 = vcmp.eq.f32.partialorder %v794_v0, inf }
  0x68   :  { %vm383_vm3 = vcmp.eq.f32.partialorder %v794_v0, 0.0  ;;  %v384_v33 = vand.u32 2147483648, %v794_v0  ;;  %vm411_vm4 = vcmp.eq.f32.partialorder %v819_v29, inf  ;;  %vm413_vm5 = vcmp.eq.f32.partialorder %v819_v29, 0.0 }
  0x69   :  { %v414_v14 = vand.u32 2147483648, %v819_v29  ;;  %vm419_vm7 = vcmp.eq.f32.partialorder %v824_v46, inf  ;;  %vm421_vm8 = vcmp.eq.f32.partialorder %v824_v46, 0.0  ;;  %v422_v26 = vand.u32 2147483648, %v824_v46 }
  0x6a   :  { %v511_v43 = vpop.eup %510  ;;  %vm427_vm2 = vcmp.eq.f32.partialorder %v829_v4, inf  ;;  %v430_v22 = vand.u32 2147483648, %v829_v4  ;;  %v241_v2 = vadd.f32 %v844_v9, %v234_v20  ;;  %v407_v27 = vsel %vm344_vm0, %v808_v45, 0.0 }
  0x6b   :  { %v513_v32 = vpop.eup %512  ;;  %v356_v28 = vmul.f32 %v511_v43, %v773_v40  ;;  %v444_v18 = vadd.f32 %v852_v48, %v847_v19  ;;  %v100_v20 = vmul.f32 0.5, %v842_v8  ;;  %v398_v6 = vmul.f32 %v857_v23, %v857_v23 }
  0x6c   :  { %v515_v12 = vpop.eup %514  ;;  %v364_v13 = vmul.f32 %v513_v32, %v778_v25  ;;  %vm970_vm0 = vcmp.gt.f32.partialorder %v742_v51, 0.0 }
  0x6d   :  { %v517_v15 = vpop.eup %516  ;;  %v358_v31 = vsel %vm357_vm10, %v773_v40, %v356_v28  ;;  %v372_v16 = vmul.f32 %v515_v12, %v783_v37  ;;  %vm429_vm10 = vcmp.eq.f32.partialorder %v829_v4, 0.0  ;;  %v438_v40 = vand.u32 2147483648, %v838_v7 }
  0x6e   :  { %v361_v55 = vsel %vm359_vm11, %v360_v61, %v358_v31  ;;  %v366_v47 = vsel %vm365_vm12, %v778_v25, %v364_v13  ;;  %v380_v53 = vmul.f32 %v517_v15, %v794_v0  ;;  %v519_v17 = vpop.eup %518  ;;  %vm435_vm11 = vcmp.eq.f32.partialorder %v838_v7, inf }
  0x6f   :  { %v369_v49 = vsel %vm367_vm13, %v368_v63, %v366_v47  ;;  %v374_v21 = vsel %vm373_vm14, %v783_v37, %v372_v16  ;;  %v521_v11 = vpop.eup %520  ;;  %v410_v10 = vmul.f32 %v519_v17, %v819_v29  ;;  %vm437_vm12 = vcmp.eq.f32.partialorder %v838_v7, 0.0 }
  0x70   :  { %v377_v56 = vsel %vm375_vm15, %v376_v5, %v374_v21  ;;  %v382_v60 = vsel %vm381_vm1, %v794_v0, %v380_v53  ;;  %v523_v54 = vpop.eup %522  ;;  %v418_v35 = vmul.f32 %v521_v11, %v824_v46  ;;  %v242_v45 = vsel %vm970_vm0, %v241_v2, 0.0 }
  0x71   :  { %v385_v59 = vsel %vm383_vm3, %v384_v33, %v382_v60  ;;  %v391_v34 = vsub.f32 %v361_v55, %v377_v56  ;;  %v525_v36 = vpop.eup %524  ;;  %v412_v39 = vsel %vm411_vm4, %v819_v29, %v410_v10  ;;  %v426_v41 = vmul.f32 %v523_v54, %v829_v4 }
  0x72   :  { %v394_v62 = vsub.f32 %v369_v49, %v385_v59  ;;  %v415_v37 = vsel %vm413_vm5, %v414_v14, %v412_v39  ;;  %v420_v0 = vsel %vm419_vm7, %v824_v46, %v418_v35  ;;  %v434_v1 = vmul.f32 %v525_v36, %v838_v7 }
  0x73   :  { %v392_v25 = vmul.f32 %v391_v34, %v391_v34  ;;  %v423_v50 = vsel %vm421_vm8, %v422_v26, %v420_v0  ;;  %v428_v57 = vsel %vm427_vm2, %v829_v4, %v426_v41  ;;  %v451_v61 = vsub.f32 %v738_v30, %v407_v27 }
  0x74   :  { %v395_v3 = vmul.f32 %v394_v62, %v394_v62  ;;  %v431_v24 = vsel %vm429_vm10, %v430_v22, %v428_v57  ;;  %v436_v29 = vsel %vm435_vm11, %v838_v7, %v434_v1  ;;  %v243_v5 = vadd.f32 %v242_v45, %v100_v20 }
  0x75   :  { %v393_v42 = vadd.f32 %v392_v25, %v849_v52  ;;  %v439_v46 = vsel %vm437_vm12, %v438_v40, %v436_v29  ;;  %v445_v9 = vsub.f32 %v415_v37, %v431_v24  ;;  %v452_v48 = vmul.f32 %v451_v61, %v451_v61 }
  0x76   :  { %v448_v58 = vsub.f32 %v423_v50, %v439_v46  ;;  %vm475_vm2 = vcmask 0  }
  0x77   :  { %v396_v52 = vadd.f32 %v395_v3, %v393_v42  ;;  %v446_v4 = vmul.f32 %v445_v9, %v445_v9 }
  0x78   :  { %v449_v7 = vmul.f32 %v448_v58, %v448_v58 }
  0x79   :  { %v399_v63 = vmul.f32 5.0, %v396_v52  ;;  %v447_v43 = vadd.f32 %v446_v4, %v444_v18 }
  0x7b   :  { %v400_v32 = vadd.f32 %v399_v63, %v398_v6  ;;  %v450_v19 = vadd.f32 %v449_v7, %v447_v43 }
  0x7d   :  { %v401_v8 = vsel %vm762_vm6, %v400_v32, 0.0  ;;  %v453_v28 = vmul.f32 5.0, %v450_v19 }
  0x7e   :  { %v402_v33 = vadd.f32 %v401_v8, %v243_v5 }
  0x7f   :  { %v454_v23 = vadd.f32 %v453_v28, %v452_v48 }
  0x81   :  { %v455_v51 = vsel %vm799_vm9, %v454_v23, 0.0 }
  0x82   :  { %v456_v12 = vadd.f32 %v455_v51, %v402_v33 }
  0x84   :  { %464 = vadd.xlane.f32.xlu0 %v456_v12 }
 0x111   :  { %v465_v13 = vpop.xlane.xlu0 %464 }
 0x112   :  { %v466_v30 = vrot.slane %v465_v13, 4 }
 0x114   :  { %v467_v14 = vadd.f32 %v466_v30, %v465_v13 }
 0x116   :  { %v468_v15 = vrot.slane %v467_v14, 2 }
 0x118   :  { %v469_v31 = vadd.f32 %v468_v15, %v467_v14 }
 0x11a   :  { %v470_v16 = vrot.slane %v469_v31, 1 }
 0x11c   :  { %v471_v26 = vadd.f32 %v470_v16, %v469_v31 }
 0x11e   :  { %495 = vpush %v471_v26 }
 0x14f   :  { %s496_s7 = spop %495 }
 0x150   :  { %v473_v38 = vstv %s496_s7 }
 0x151   :  { %476 = vst.msk [vmem:[#allocation8] sm:$0x1] %vm475_vm2, %v473_v38 }
 0x152   :  { %581 = shalt.err (!%p578_p6)
}
 0x153   :  { %s582_s12 = scalar_lea.hbm %s962_s2, 16 }
 0x154   :  { %p583_p7 = scmp.ne.s32.totalorder %s962_s2, %s582_s12  ;;  %p586_p8 = scmp.lt.u32.totalorder %s582_s12, %s962_s2 }
 0x156   :  { %p588_p9 = pnand %p586_p8, %p583_p7 }
 0x158   :  { %591 = shalt.err (!%p588_p9)
}
 0x159   :  { %486 = dma.vmem_to_hbm [thread:$0]  %s484_s6, 16, %s962_s2, [#allocation5]  }
 0x15a   :  { %596 = dma.done.wait [#allocation5], 16  }
 0x15b   :  { %597 = vsyncadd [#allocation5], 4294967280 }
 0x15c   :  { %490 = vsyncpa [#allocation4], 1 }
 0x15d   :  { %491 = vsyncpa [#allocation7], 1 }
 0x15e   :  { %492 = vsyncpa [#allocation5], 1 }

</bundles_post_ra>
